<compile_context>
chip_gen: v7x
topology: tpu7x:2x2x1
jax: 0.10.0
libtpu: 0.0.40
codegen_flags: <defaults>
</compile_context>

<pallas_src>
import jax
import jax.numpy as jnp
import numpy as np
from jax.experimental import pallas as pl
from jax.experimental.pallas import tpu as pltpu


# ------------------------------ Pallas kernel -------------------------------

def fused_kernel(x_ref, wx_ref, wb_ref, bxb_ref, we_ref, be_ref,
                 wih_ref, whh_ref, bg_ref, ws_ref, bs_ref, wl_ref, bl_ref,
                 out_ref, sw_ref, tw_ref):
    """SensorAttention + LSTM recurrence + TemporalAttention + output Linear."""
    T, B, D = x_ref.shape
    H = whh_ref.shape[0]
    f32 = jnp.float32

    # Load weights once; they were pre-transposed to (in, out) in the wrapper,
    # so there are no per-step transposes in the recurrence.
    wx = wx_ref[...]          # (D, D)
    wb = wb_ref[...]          # (D, D)
    we = we_ref[...]          # (D, D)
    wih = wih_ref[...]        # (D, 4H)  columns gate-major i|f|g|o
    whh = whh_ref[...]        # (H, 4H)

    # Hoist bias broadcasts out of the unrolled time loop.
    bxb = jnp.broadcast_to(bxb_ref[...], (B, D))      # bx + bb, pre-summed
    be = jnp.broadcast_to(be_ref[...], (B, D))
    bg = jnp.broadcast_to(bg_ref[...], (B, 4 * H))    # b_ih + b_hh, pre-summed

    beta = jnp.zeros((B, D), f32)
    h = jnp.zeros((B, H), f32)
    c = jnp.zeros((B, H), f32)
    hs = []

    # Fully unrolled recurrence (T is small and static) — the LLO scheduler
    # sees the whole chain and can pipeline across steps.
    for t in range(T):
        xt = x_ref[t]                                           # (B, D)

        # --- SensorAttention ---
        merged = jnp.tanh(
            jnp.dot(xt, wx, preferred_element_type=f32)
            + jnp.dot(beta, wb, preferred_element_type=f32) + bxb)
        energy = jnp.dot(merged, we, preferred_element_type=f32) + be
        e = jnp.exp(energy - jnp.max(energy, axis=1, keepdims=True))
        beta = e * pl.reciprocal(jnp.sum(e, axis=1, keepdims=True), approx=True)
        new_sig = beta * xt                                     # (B, D)
        sw_ref[:, t, :] = beta                                  # direct (B,T,D) layout

        # --- LSTM cell: one fused lane-dense (B, 4H) gate matmul pair ---
        gates = (jnp.dot(new_sig, wih, preferred_element_type=f32)
                 + jnp.dot(h, whh, preferred_element_type=f32) + bg)
        i_g = jax.nn.sigmoid(gates[:, 0 * H:1 * H])
        f_g = jax.nn.sigmoid(gates[:, 1 * H:2 * H])
        g_g = jnp.tanh(gates[:, 2 * H:3 * H])
        o_g = jax.nn.sigmoid(gates[:, 3 * H:4 * H])
        c = f_g * c + i_g * g_g
        h = o_g * jnp.tanh(c)
        hs.append(h)

    # --- TemporalAttention (algebraic rewrite, no (T,B,H) intermediate) ---
    # scores[b,t] = hs[t,b,:] . (h_last[b,:] @ Ws) + h_last[b,:] . bs
    h_last = hs[-1]                                             # (B, H)
    v = jnp.dot(h_last, ws_ref[...], preferred_element_type=f32)  # (B, H)
    cb = jnp.sum(h_last * bs_ref[...], axis=-1, keepdims=True)    # (B, 1)
    cols = [jnp.sum(hs[t] * v, axis=-1, keepdims=True) for t in range(T)]
    scores = jnp.concatenate(cols, axis=1) + cb                   # (B, T)

    m = jnp.max(scores, axis=1, keepdims=True)
    e = jnp.exp(scores - m)
    w = e * pl.reciprocal(jnp.sum(e, axis=1, keepdims=True), approx=True)  # (B, T)
    tw_ref[...] = w                                               # direct (B,T) layout

    hidden_out = w[:, 0:1] * hs[0]
    for t in range(1, T):
        hidden_out = hidden_out + w[:, t:t + 1] * hs[t]           # (B, H)

    # --- Output Linear ---
    out_ref[...] = (jnp.dot(hidden_out, wl_ref[...], preferred_element_type=f32)
                    + bl_ref[...])


# -------------------------------- Wrapper ------------------------------------

def _full_spec(shape):
    n = len(shape)
    return pl.BlockSpec(shape, lambda *args, n=n: (0,) * n)


def attn_lstm_forward(x, params):
    """x: (T, B, D) float32. Returns (out (B,O), sensor_w (B,T,D), temporal_w (B,T))."""
    T, B, D = x.shape
    H = params['whh'].shape[-1]
    O = params['wl'].shape[0]
    f32 = jnp.float32

    # Host-side weight prep: transpose once to (in, out), pre-sum biases.
    wx_t = params['wx'].T                       # (D, D)
    wb_t = params['wb'].T                       # (D, D)
    we_t = params['we'].T                       # (D, D)
    bxb = params['bx'] + params['bb']           # (1, D)
    wih_t = params['wih'].T                     # (D, 4H) gate-major columns i|f|g|o
    whh_t = params['whh'].T                     # (H, 4H)
    bg = (params['bih'] + params['bhh']).reshape(1, 4 * H)
    wl_t = params['wl'].T                       # (H, O)

    out, sw, tw = pl.pallas_call(
        fused_kernel,
        out_shape=(jax.ShapeDtypeStruct((B, O), f32),
                   jax.ShapeDtypeStruct((B, T, D), f32),
                   jax.ShapeDtypeStruct((B, T), f32)),
        grid_spec=pltpu.PrefetchScalarGridSpec(
            num_scalar_prefetch=0,
            grid=(1,),
            in_specs=[
                _full_spec((T, B, D)),                       # x
                _full_spec((D, D)), _full_spec((D, D)),      # Wx^T, Wb^T
                _full_spec((1, D)),                          # bx + bb
                _full_spec((D, D)), _full_spec((1, D)),      # We^T, be
                _full_spec((D, 4 * H)),                      # W_ih^T (fused gates)
                _full_spec((H, 4 * H)),                      # W_hh^T (fused gates)
                _full_spec((1, 4 * H)),                      # b_ih + b_hh
                _full_spec((H, H)), _full_spec((1, H)),      # Ws (orig layout), bs
                _full_spec((H, O)), _full_spec((1, O)),      # Wl^T, bl
            ],
            out_specs=[_full_spec((B, O)),
                       _full_spec((B, T, D)),
                       _full_spec((B, T))],
        ),
        compiler_params=pltpu.CompilerParams(
            dimension_semantics=("arbitrary",)),
    )(x, wx_t, wb_t, bxb, we_t, params['be'],
      wih_t, whh_t, bg,
      params['ws'], params['bs'], wl_t, params['bl'])

    return out, sw, tw


# ------------------------------ Parameter init --------------------------------

def init_params(key, D, H, O):
    ks = jax.random.split(key, 9)

    def linear(k, out_dim, in_dim):
        k1, k2 = jax.random.split(k)
        bound = in_dim ** -0.5
        w = jax.random.uniform(k1, (out_dim, in_dim), jnp.float32, -bound, bound)
        b = jax.random.uniform(k2, (1, out_dim), jnp.float32, -bound, bound)
        return w, b

    p = {}
    p['wx'], p['bx'] = linear(ks[0], D, D)   # SensorAttention.linear_x
    p['wb'], p['bb'] = linear(ks[1], D, D)   # SensorAttention.linear_b
    p['we'], p['be'] = linear(ks[2], D, D)   # SensorAttention.linear_e

    bound = H ** -0.5                        # PyTorch LSTM init range
    p['wih'] = jax.random.uniform(ks[3], (4 * H, D), jnp.float32, -bound, bound)
    p['whh'] = jax.random.uniform(ks[4], (4 * H, H), jnp.float32, -bound, bound)
    p['bih'] = jax.random.uniform(ks[5], (4 * H,), jnp.float32, -bound, bound)
    p['bhh'] = jax.random.uniform(ks[6], (4 * H,), jnp.float32, -bound, bound)

    p['ws'], p['bs'] = linear(ks[7], H, H)   # TemporalAttention.linear_s
    p['wl'], p['bl'] = linear(ks[8], O, H)   # output Linear
    return p


# ---------------------------- Pure-JAX reference -------------------------------

def reference_forward(x, params):
    T, B, D = x.shape
    H = params['whh'].shape[-1]
    beta = jnp.zeros((B, D), jnp.float32)
    h = jnp.zeros((B, H), jnp.float32)
    c = jnp.zeros((B, H), jnp.float32)
    hs_list, sw_list = [], []
    for t in range(T):
        xt = x[t]
        signal = xt @ params['wx'].T + params['bx']
        bout = beta @ params['wb'].T + params['bb']
        merged = jnp.tanh(signal + bout)
        energy = merged @ params['we'].T + params['be']
        beta = jax.nn.softmax(energy, axis=1)
        ns = beta * xt
        sw_list.append(beta)
        gates = ns @ params['wih'].T + params['bih'] + h @ params['whh'].T + params['bhh']
        i = jax.nn.sigmoid(gates[:, :H])
        f = jax.nn.sigmoid(gates[:, H:2 * H])
        g = jnp.tanh(gates[:, 2 * H:3 * H])
        o = jax.nn.sigmoid(gates[:, 3 * H:])
        c = f * c + i * g
        h = o * jnp.tanh(c)
        hs_list.append(h)
    hs = jnp.stack(hs_list)
    sw = jnp.stack(sw_list)
    h_last = hs[-1]
    iv = jnp.einsum('tbh,gh->tbg', hs, params['ws']) + params['bs']
    scores = jnp.sum(iv * h_last[None], axis=-1)
    w = jax.nn.softmax(scores, axis=0)
    hidden_out = jnp.sum(w[..., None] * hs, axis=0)
    out = hidden_out @ params['wl'].T + params['bl']
    return out, jnp.transpose(sw, (1, 0, 2)), w.T


# ----------------------------------- Main --------------------------------------

if __name__ == "__main__":
    T, B, D, H, O = 8, 4, 6, 32, 5

    key = jax.random.PRNGKey(0)
    kx, kp = jax.random.split(key)
    x = jax.random.normal(kx, (T, B, D), jnp.float32)
    params = init_params(kp, D, H, O)

    out, sens_w, temp_w = attn_lstm_forward(x, params)
    jax.block_until_ready((out, sens_w, temp_w))

    out_r, sens_r, temp_r = reference_forward(x, params)
    assert out.shape == (B, O) and sens_w.shape == (B, T, D) and temp_w.shape == (B, T)
    assert np.allclose(np.asarray(out), np.asarray(out_r), rtol=1e-2, atol=1e-2)
    assert np.allclose(np.asarray(sens_w), np.asarray(sens_r), rtol=1e-2, atol=1e-2)
    assert np.allclose(np.asarray(temp_w), np.asarray(temp_r), rtol=1e-2, atol=1e-2)

    print("KERNEL_OK")
</pallas_src>

<mosaic_0001>
module attributes {stable_mosaic.version = 11 : i64} {
  func.func @fused_kernel(%arg0: i32, %arg1: memref<8x4x6xf32, #tpu.memory_space<vmem>>, %arg2: memref<6x6xf32, #tpu.memory_space<vmem>>, %arg3: memref<6x6xf32, #tpu.memory_space<vmem>>, %arg4: memref<1x6xf32, #tpu.memory_space<vmem>>, %arg5: memref<6x6xf32, #tpu.memory_space<vmem>>, %arg6: memref<1x6xf32, #tpu.memory_space<vmem>>, %arg7: memref<6x128xf32, #tpu.memory_space<vmem>>, %arg8: memref<32x128xf32, #tpu.memory_space<vmem>>, %arg9: memref<1x128xf32, #tpu.memory_space<vmem>>, %arg10: memref<32x32xf32, #tpu.memory_space<vmem>>, %arg11: memref<1x32xf32, #tpu.memory_space<vmem>>, %arg12: memref<32x5xf32, #tpu.memory_space<vmem>>, %arg13: memref<1x5xf32, #tpu.memory_space<vmem>>, %arg14: memref<4x5xf32, #tpu.memory_space<vmem>>, %arg15: memref<4x8x6xf32, #tpu.memory_space<vmem>>, %arg16: memref<4x8xf32, #tpu.memory_space<vmem>>) attributes {dimension_semantics = [#tpu.dimension_semantics<arbitrary>], iteration_bounds = array<i64: 1>, scalar_prefetch = 0 : i64, scratch_operands = 0 : i64, tpu.core_type = #tpu.core_type<tc>, window_params = [{pipeline_mode = #tpu.pipeline_mode<synchronous>, transform_indices = @transform_0, window_bounds = array<i64: 8, 4, 6>}, {pipeline_mode = #tpu.pipeline_mode<synchronous>, transform_indices = @transform_1, window_bounds = array<i64: 6, 6>}, {pipeline_mode = #tpu.pipeline_mode<synchronous>, transform_indices = @transform_2, window_bounds = array<i64: 6, 6>}, {pipeline_mode = #tpu.pipeline_mode<synchronous>, transform_indices = @transform_3, window_bounds = array<i64: 1, 6>}, {pipeline_mode = #tpu.pipeline_mode<synchronous>, transform_indices = @transform_4, window_bounds = array<i64: 6, 6>}, {pipeline_mode = #tpu.pipeline_mode<synchronous>, transform_indices = @transform_5, window_bounds = array<i64: 1, 6>}, {pipeline_mode = #tpu.pipeline_mode<synchronous>, transform_indices = @transform_6, window_bounds = array<i64: 6, 128>}, {pipeline_mode = #tpu.pipeline_mode<synchronous>, transform_indices = @transform_7, window_bounds = array<i64: 32, 128>}, {pipeline_mode = #tpu.pipeline_mode<synchronous>, transform_indices = @transform_8, window_bounds = array<i64: 1, 128>}, {pipeline_mode = #tpu.pipeline_mode<synchronous>, transform_indices = @transform_9, window_bounds = array<i64: 32, 32>}, {pipeline_mode = #tpu.pipeline_mode<synchronous>, transform_indices = @transform_10, window_bounds = array<i64: 1, 32>}, {pipeline_mode = #tpu.pipeline_mode<synchronous>, transform_indices = @transform_11, window_bounds = array<i64: 32, 5>}, {pipeline_mode = #tpu.pipeline_mode<synchronous>, transform_indices = @transform_12, window_bounds = array<i64: 1, 5>}, {pipeline_mode = #tpu.pipeline_mode<synchronous>, transform_indices = @transform_13, window_bounds = array<i64: 4, 5>}, {pipeline_mode = #tpu.pipeline_mode<synchronous>, transform_indices = @transform_14, window_bounds = array<i64: 4, 8, 6>}, {pipeline_mode = #tpu.pipeline_mode<synchronous>, transform_indices = @transform_15, window_bounds = array<i64: 4, 8>}]} {
    %c0 = arith.constant 0 : index
    %c0_0 = arith.constant 0 : index
    %0 = vector.load %arg2[%c0, %c0_0] : memref<6x6xf32, #tpu.memory_space<vmem>>, vector<6x6xf32>
    %c0_1 = arith.constant 0 : index
    %c0_2 = arith.constant 0 : index
    %1 = vector.load %arg3[%c0_1, %c0_2] : memref<6x6xf32, #tpu.memory_space<vmem>>, vector<6x6xf32>
    %c0_3 = arith.constant 0 : index
    %c0_4 = arith.constant 0 : index
    %2 = vector.load %arg5[%c0_3, %c0_4] : memref<6x6xf32, #tpu.memory_space<vmem>>, vector<6x6xf32>
    %c0_5 = arith.constant 0 : index
    %c0_6 = arith.constant 0 : index
    %3 = vector.load %arg7[%c0_5, %c0_6] : memref<6x128xf32, #tpu.memory_space<vmem>>, vector<6x128xf32>
    %c0_7 = arith.constant 0 : index
    %c0_8 = arith.constant 0 : index
    %4 = vector.load %arg8[%c0_7, %c0_8] : memref<32x128xf32, #tpu.memory_space<vmem>>, vector<32x128xf32>
    %c0_9 = arith.constant 0 : index
    %c0_10 = arith.constant 0 : index
    %5 = vector.load %arg4[%c0_9, %c0_10] : memref<1x6xf32, #tpu.memory_space<vmem>>, vector<1x6xf32>
    %6 = vector.shape_cast %5 : vector<1x6xf32> to vector<1x6xf32>
    %7 = vector.broadcast %6 : vector<1x6xf32> to vector<4x6xf32>
    %c0_11 = arith.constant 0 : index
    %c0_12 = arith.constant 0 : index
    %8 = vector.load %arg6[%c0_11, %c0_12] : memref<1x6xf32, #tpu.memory_space<vmem>>, vector<1x6xf32>
    %9 = vector.shape_cast %8 : vector<1x6xf32> to vector<1x6xf32>
    %10 = vector.broadcast %9 : vector<1x6xf32> to vector<4x6xf32>
    %c0_13 = arith.constant 0 : index
    %c0_14 = arith.constant 0 : index
    %11 = vector.load %arg9[%c0_13, %c0_14] : memref<1x128xf32, #tpu.memory_space<vmem>>, vector<1x128xf32>
    %12 = vector.shape_cast %11 : vector<1x128xf32> to vector<1x128xf32>
    %13 = vector.broadcast %12 : vector<1x128xf32> to vector<4x128xf32>
    %cst = arith.constant 0.000000e+00 : f32
    %14 = vector.broadcast %cst : f32 to vector<4x6xf32>
    %cst_15 = arith.constant 0.000000e+00 : f32
    %15 = vector.broadcast %cst_15 : f32 to vector<4x32xf32>
    %cst_16 = arith.constant 0.000000e+00 : f32
    %16 = vector.broadcast %cst_16 : f32 to vector<4x32xf32>
    %c0_17 = arith.constant 0 : index
    %c0_18 = arith.constant 0 : index
    %c0_19 = arith.constant 0 : index
    %17 = vector.load %arg1[%c0_17, %c0_18, %c0_19] : memref<8x4x6xf32, #tpu.memory_space<vmem>>, vector<1x4x6xf32>
    %18 = vector.shape_cast %17 : vector<1x4x6xf32> to vector<4x6xf32>
    %cst_20 = arith.constant dense<0.000000e+00> : vector<4x6xf32>
    %19 = tpu.matmul %18, %0, %cst_20 {dimension_numbers = #tpu.dot_dimension_numbers<[1], [0], [0], [1], [0, 0, 1, 1], [], []>} : vector<4x6xf32>, vector<6x6xf32>, vector<4x6xf32> -> vector<4x6xf32>
    %cst_21 = arith.constant dense<0.000000e+00> : vector<4x6xf32>
    %20 = tpu.matmul %14, %1, %cst_21 {dimension_numbers = #tpu.dot_dimension_numbers<[1], [0], [0], [1], [0, 0, 1, 1], [], []>} : vector<4x6xf32>, vector<6x6xf32>, vector<4x6xf32> -> vector<4x6xf32>
    %21 = arith.addf %19, %20 : vector<4x6xf32>
    %22 = arith.addf %21, %7 : vector<4x6xf32>
    %23 = math.tanh %22 : vector<4x6xf32>
    %cst_22 = arith.constant dense<0.000000e+00> : vector<4x6xf32>
    %24 = tpu.matmul %23, %2, %cst_22 {dimension_numbers = #tpu.dot_dimension_numbers<[1], [0], [0], [1], [0, 0, 1, 1], [], []>} : vector<4x6xf32>, vector<6x6xf32>, vector<4x6xf32> -> vector<4x6xf32>
    %25 = arith.addf %24, %10 : vector<4x6xf32>
    %cst_23 = arith.constant dense<0xFF800000> : vector<4xf32>
    %26 = vector.multi_reduction <maximumf>, %25, %cst_23 [1] : vector<4x6xf32> to vector<4xf32>
    %27 = vector.shape_cast %26 : vector<4xf32> to vector<4x1xf32>
    %28 = vector.broadcast %27 : vector<4x1xf32> to vector<4x6xf32>
    %29 = arith.subf %25, %28 : vector<4x6xf32>
    %30 = math.exp %29 : vector<4x6xf32>
    %cst_24 = arith.constant dense<0.000000e+00> : vector<4xf32>
    %31 = vector.multi_reduction <add>, %30, %cst_24 [1] : vector<4x6xf32> to vector<4xf32>
    %32 = vector.shape_cast %31 : vector<4xf32> to vector<4x1xf32>
    %33 = tpu.reciprocal %32 {approx = true} : vector<4x1xf32> -> vector<4x1xf32>
    %34 = vector.broadcast %33 : vector<4x1xf32> to vector<4x6xf32>
    %35 = arith.mulf %30, %34 : vector<4x6xf32>
    %36 = arith.mulf %35, %18 : vector<4x6xf32>
    %c0_25 = arith.constant 0 : index
    %c0_26 = arith.constant 0 : index
    %c0_27 = arith.constant 0 : index
    %37 = vector.load %arg15[%c0_25, %c0_26, %c0_27] : memref<4x8x6xf32, #tpu.memory_space<vmem>>, vector<4x1x6xf32>
    %38 = vector.shape_cast %37 : vector<4x1x6xf32> to vector<4x6xf32>
    %39 = vector.shape_cast %35 : vector<4x6xf32> to vector<4x1x6xf32>
    tpu.vector_store %arg15[%c0_25, %c0_26, %c0_27], %39 {strides = array<i32>} : memref<4x8x6xf32, #tpu.memory_space<vmem>>, vector<4x1x6xf32>,
    %cst_28 = arith.constant dense<0.000000e+00> : vector<4x128xf32>
    %40 = tpu.matmul %36, %3, %cst_28 {dimension_numbers = #tpu.dot_dimension_numbers<[1], [0], [0], [1], [0, 0, 1, 1], [], []>} : vector<4x6xf32>, vector<6x128xf32>, vector<4x128xf32> -> vector<4x128xf32>
    %cst_29 = arith.constant dense<0.000000e+00> : vector<4x128xf32>
    %41 = tpu.matmul %15, %4, %cst_29 {dimension_numbers = #tpu.dot_dimension_numbers<[1], [0], [0], [1], [0, 0, 1, 1], [], []>} : vector<4x32xf32>, vector<32x128xf32>, vector<4x128xf32> -> vector<4x128xf32>
    %42 = arith.addf %40, %41 : vector<4x128xf32>
    %43 = arith.addf %42, %13 : vector<4x128xf32>
    %44 = vector.extract_strided_slice %43 {offsets = [0, 0], sizes = [4, 32], strides = [1, 1]} : vector<4x128xf32> to vector<4x32xf32>
    %45 = arith.negf %44 : vector<4x32xf32>
    %46 = math.exp %45 : vector<4x32xf32>
    %cst_30 = arith.constant 1.000000e+00 : f32
    %47 = vector.broadcast %cst_30 : f32 to vector<4x32xf32>
    %48 = arith.addf %47, %46 : vector<4x32xf32>
    %49 = arith.divf %47, %48 : vector<4x32xf32>
    %50 = vector.extract_strided_slice %43 {offsets = [0, 32], sizes = [4, 32], strides = [1, 1]} : vector<4x128xf32> to vector<4x32xf32>
    %51 = arith.negf %50 : vector<4x32xf32>
    %52 = math.exp %51 : vector<4x32xf32>
    %cst_31 = arith.constant 1.000000e+00 : f32
    %53 = vector.broadcast %cst_31 : f32 to vector<4x32xf32>
    %54 = arith.addf %53, %52 : vector<4x32xf32>
    %55 = arith.divf %53, %54 : vector<4x32xf32>
    %56 = vector.extract_strided_slice %43 {offsets = [0, 64], sizes = [4, 32], strides = [1, 1]} : vector<4x128xf32> to vector<4x32xf32>
    %57 = math.tanh %56 : vector<4x32xf32>
    %58 = vector.extract_strided_slice %43 {offsets = [0, 96], sizes = [4, 32], strides = [1, 1]} : vector<4x128xf32> to vector<4x32xf32>
    %59 = arith.negf %58 : vector<4x32xf32>
    %60 = math.exp %59 : vector<4x32xf32>
    %cst_32 = arith.constant 1.000000e+00 : f32
    %61 = vector.broadcast %cst_32 : f32 to vector<4x32xf32>
    %62 = arith.addf %61, %60 : vector<4x32xf32>
    %63 = arith.divf %61, %62 : vector<4x32xf32>
    %64 = arith.mulf %55, %16 : vector<4x32xf32>
    %65 = arith.mulf %49, %57 : vector<4x32xf32>
    %66 = arith.addf %64, %65 : vector<4x32xf32>
    %67 = math.tanh %66 : vector<4x32xf32>
    %68 = arith.mulf %63, %67 : vector<4x32xf32>
    %c1 = arith.constant 1 : index
    %c0_33 = arith.constant 0 : index
    %c0_34 = arith.constant 0 : index
    %69 = vector.load %arg1[%c1, %c0_33, %c0_34] : memref<8x4x6xf32, #tpu.memory_space<vmem>>, vector<1x4x6xf32>
    %70 = vector.shape_cast %69 : vector<1x4x6xf32> to vector<4x6xf32>
    %cst_35 = arith.constant dense<0.000000e+00> : vector<4x6xf32>
    %71 = tpu.matmul %70, %0, %cst_35 {dimension_numbers = #tpu.dot_dimension_numbers<[1], [0], [0], [1], [0, 0, 1, 1], [], []>} : vector<4x6xf32>, vector<6x6xf32>, vector<4x6xf32> -> vector<4x6xf32>
    %cst_36 = arith.constant dense<0.000000e+00> : vector<4x6xf32>
    %72 = tpu.matmul %35, %1, %cst_36 {dimension_numbers = #tpu.dot_dimension_numbers<[1], [0], [0], [1], [0, 0, 1, 1], [], []>} : vector<4x6xf32>, vector<6x6xf32>, vector<4x6xf32> -> vector<4x6xf32>
    %73 = arith.addf %71, %72 : vector<4x6xf32>
    %74 = arith.addf %73, %7 : vector<4x6xf32>
    %75 = math.tanh %74 : vector<4x6xf32>
    %cst_37 = arith.constant dense<0.000000e+00> : vector<4x6xf32>
    %76 = tpu.matmul %75, %2, %cst_37 {dimension_numbers = #tpu.dot_dimension_numbers<[1], [0], [0], [1], [0, 0, 1, 1], [], []>} : vector<4x6xf32>, vector<6x6xf32>, vector<4x6xf32> -> vector<4x6xf32>
    %77 = arith.addf %76, %10 : vector<4x6xf32>
    %cst_38 = arith.constant dense<0xFF800000> : vector<4xf32>
    %78 = vector.multi_reduction <maximumf>, %77, %cst_38 [1] : vector<4x6xf32> to vector<4xf32>
    %79 = vector.shape_cast %78 : vector<4xf32> to vector<4x1xf32>
    %80 = vector.broadcast %79 : vector<4x1xf32> to vector<4x6xf32>
    %81 = arith.subf %77, %80 : vector<4x6xf32>
    %82 = math.exp %81 : vector<4x6xf32>
    %cst_39 = arith.constant dense<0.000000e+00> : vector<4xf32>
    %83 = vector.multi_reduction <add>, %82, %cst_39 [1] : vector<4x6xf32> to vector<4xf32>
    %84 = vector.shape_cast %83 : vector<4xf32> to vector<4x1xf32>
    %85 = tpu.reciprocal %84 {approx = true} : vector<4x1xf32> -> vector<4x1xf32>
    %86 = vector.broadcast %85 : vector<4x1xf32> to vector<4x6xf32>
    %87 = arith.mulf %82, %86 : vector<4x6xf32>
    %88 = arith.mulf %87, %70 : vector<4x6xf32>
    %c0_40 = arith.constant 0 : index
    %c1_41 = arith.constant 1 : index
    %c0_42 = arith.constant 0 : index
    %89 = vector.load %arg15[%c0_40, %c1_41, %c0_42] : memref<4x8x6xf32, #tpu.memory_space<vmem>>, vector<4x1x6xf32>
    %90 = vector.shape_cast %89 : vector<4x1x6xf32> to vector<4x6xf32>
    %91 = vector.shape_cast %87 : vector<4x6xf32> to vector<4x1x6xf32>
    tpu.vector_store %arg15[%c0_40, %c1_41, %c0_42], %91 {strides = array<i32>} : memref<4x8x6xf32, #tpu.memory_space<vmem>>, vector<4x1x6xf32>,
    %cst_43 = arith.constant dense<0.000000e+00> : vector<4x128xf32>
    %92 = tpu.matmul %88, %3, %cst_43 {dimension_numbers = #tpu.dot_dimension_numbers<[1], [0], [0], [1], [0, 0, 1, 1], [], []>} : vector<4x6xf32>, vector<6x128xf32>, vector<4x128xf32> -> vector<4x128xf32>
    %cst_44 = arith.constant dense<0.000000e+00> : vector<4x128xf32>
    %93 = tpu.matmul %68, %4, %cst_44 {dimension_numbers = #tpu.dot_dimension_numbers<[1], [0], [0], [1], [0, 0, 1, 1], [], []>} : vector<4x32xf32>, vector<32x128xf32>, vector<4x128xf32> -> vector<4x128xf32>
    %94 = arith.addf %92, %93 : vector<4x128xf32>
    %95 = arith.addf %94, %13 : vector<4x128xf32>
    %96 = vector.extract_strided_slice %95 {offsets = [0, 0], sizes = [4, 32], strides = [1, 1]} : vector<4x128xf32> to vector<4x32xf32>
    %97 = arith.negf %96 : vector<4x32xf32>
    %98 = math.exp %97 : vector<4x32xf32>
    %cst_45 = arith.constant 1.000000e+00 : f32
    %99 = vector.broadcast %cst_45 : f32 to vector<4x32xf32>
    %100 = arith.addf %99, %98 : vector<4x32xf32>
    %101 = arith.divf %99, %100 : vector<4x32xf32>
    %102 = vector.extract_strided_slice %95 {offsets = [0, 32], sizes = [4, 32], strides = [1, 1]} : vector<4x128xf32> to vector<4x32xf32>
    %103 = arith.negf %102 : vector<4x32xf32>
    %104 = math.exp %103 : vector<4x32xf32>
    %cst_46 = arith.constant 1.000000e+00 : f32
    %105 = vector.broadcast %cst_46 : f32 to vector<4x32xf32>
    %106 = arith.addf %105, %104 : vector<4x32xf32>
    %107 = arith.divf %105, %106 : vector<4x32xf32>
    %108 = vector.extract_strided_slice %95 {offsets = [0, 64], sizes = [4, 32], strides = [1, 1]} : vector<4x128xf32> to vector<4x32xf32>
    %109 = math.tanh %108 : vector<4x32xf32>
    %110 = vector.extract_strided_slice %95 {offsets = [0, 96], sizes = [4, 32], strides = [1, 1]} : vector<4x128xf32> to vector<4x32xf32>
    %111 = arith.negf %110 : vector<4x32xf32>
    %112 = math.exp %111 : vector<4x32xf32>
    %cst_47 = arith.constant 1.000000e+00 : f32
    %113 = vector.broadcast %cst_47 : f32 to vector<4x32xf32>
    %114 = arith.addf %113, %112 : vector<4x32xf32>
    %115 = arith.divf %113, %114 : vector<4x32xf32>
    %116 = arith.mulf %107, %66 : vector<4x32xf32>
    %117 = arith.mulf %101, %109 : vector<4x32xf32>
    %118 = arith.addf %116, %117 : vector<4x32xf32>
    %119 = math.tanh %118 : vector<4x32xf32>
    %120 = arith.mulf %115, %119 : vector<4x32xf32>
    %c2 = arith.constant 2 : index
    %c0_48 = arith.constant 0 : index
    %c0_49 = arith.constant 0 : index
    %121 = vector.load %arg1[%c2, %c0_48, %c0_49] : memref<8x4x6xf32, #tpu.memory_space<vmem>>, vector<1x4x6xf32>
    %122 = vector.shape_cast %121 : vector<1x4x6xf32> to vector<4x6xf32>
    %cst_50 = arith.constant dense<0.000000e+00> : vector<4x6xf32>
    %123 = tpu.matmul %122, %0, %cst_50 {dimension_numbers = #tpu.dot_dimension_numbers<[1], [0], [0], [1], [0, 0, 1, 1], [], []>} : vector<4x6xf32>, vector<6x6xf32>, vector<4x6xf32> -> vector<4x6xf32>
    %cst_51 = arith.constant dense<0.000000e+00> : vector<4x6xf32>
    %124 = tpu.matmul %87, %1, %cst_51 {dimension_numbers = #tpu.dot_dimension_numbers<[1], [0], [0], [1], [0, 0, 1, 1], [], []>} : vector<4x6xf32>, vector<6x6xf32>, vector<4x6xf32> -> vector<4x6xf32>
    %125 = arith.addf %123, %124 : vector<4x6xf32>
    %126 = arith.addf %125, %7 : vector<4x6xf32>
    %127 = math.tanh %126 : vector<4x6xf32>
    %cst_52 = arith.constant dense<0.000000e+00> : vector<4x6xf32>
    %128 = tpu.matmul %127, %2, %cst_52 {dimension_numbers = #tpu.dot_dimension_numbers<[1], [0], [0], [1], [0, 0, 1, 1], [], []>} : vector<4x6xf32>, vector<6x6xf32>, vector<4x6xf32> -> vector<4x6xf32>
    %129 = arith.addf %128, %10 : vector<4x6xf32>
    %cst_53 = arith.constant dense<0xFF800000> : vector<4xf32>
    %130 = vector.multi_reduction <maximumf>, %129, %cst_53 [1] : vector<4x6xf32> to vector<4xf32>
    %131 = vector.shape_cast %130 : vector<4xf32> to vector<4x1xf32>
    %132 = vector.broadcast %131 : vector<4x1xf32> to vector<4x6xf32>
    %133 = arith.subf %129, %132 : vector<4x6xf32>
    %134 = math.exp %133 : vector<4x6xf32>
    %cst_54 = arith.constant dense<0.000000e+00> : vector<4xf32>
    %135 = vector.multi_reduction <add>, %134, %cst_54 [1] : vector<4x6xf32> to vector<4xf32>
    %136 = vector.shape_cast %135 : vector<4xf32> to vector<4x1xf32>
    %137 = tpu.reciprocal %136 {approx = true} : vector<4x1xf32> -> vector<4x1xf32>
    %138 = vector.broadcast %137 : vector<4x1xf32> to vector<4x6xf32>
    %139 = arith.mulf %134, %138 : vector<4x6xf32>
    %140 = arith.mulf %139, %122 : vector<4x6xf32>
    %c0_55 = arith.constant 0 : index
    %c2_56 = arith.constant 2 : index
    %c0_57 = arith.constant 0 : index
    %141 = vector.load %arg15[%c0_55, %c2_56, %c0_57] : memref<4x8x6xf32, #tpu.memory_space<vmem>>, vector<4x1x6xf32>
    %142 = vector.shape_cast %141 : vector<4x1x6xf32> to vector<4x6xf32>
    %143 = vector.shape_cast %139 : vector<4x6xf32> to vector<4x1x6xf32>
    tpu.vector_store %arg15[%c0_55, %c2_56, %c0_57], %143 {strides = array<i32>} : memref<4x8x6xf32, #tpu.memory_space<vmem>>, vector<4x1x6xf32>,
    %cst_58 = arith.constant dense<0.000000e+00> : vector<4x128xf32>
    %144 = tpu.matmul %140, %3, %cst_58 {dimension_numbers = #tpu.dot_dimension_numbers<[1], [0], [0], [1], [0, 0, 1, 1], [], []>} : vector<4x6xf32>, vector<6x128xf32>, vector<4x128xf32> -> vector<4x128xf32>
    %cst_59 = arith.constant dense<0.000000e+00> : vector<4x128xf32>
    %145 = tpu.matmul %120, %4, %cst_59 {dimension_numbers = #tpu.dot_dimension_numbers<[1], [0], [0], [1], [0, 0, 1, 1], [], []>} : vector<4x32xf32>, vector<32x128xf32>, vector<4x128xf32> -> vector<4x128xf32>
    %146 = arith.addf %144, %145 : vector<4x128xf32>
    %147 = arith.addf %146, %13 : vector<4x128xf32>
    %148 = vector.extract_strided_slice %147 {offsets = [0, 0], sizes = [4, 32], strides = [1, 1]} : vector<4x128xf32> to vector<4x32xf32>
    %149 = arith.negf %148 : vector<4x32xf32>
    %150 = math.exp %149 : vector<4x32xf32>
    %cst_60 = arith.constant 1.000000e+00 : f32
    %151 = vector.broadcast %cst_60 : f32 to vector<4x32xf32>
    %152 = arith.addf %151, %150 : vector<4x32xf32>
    %153 = arith.divf %151, %152 : vector<4x32xf32>
    %154 = vector.extract_strided_slice %147 {offsets = [0, 32], sizes = [4, 32], strides = [1, 1]} : vector<4x128xf32> to vector<4x32xf32>
    %155 = arith.negf %154 : vector<4x32xf32>
    %156 = math.exp %155 : vector<4x32xf32>
    %cst_61 = arith.constant 1.000000e+00 : f32
    %157 = vector.broadcast %cst_61 : f32 to vector<4x32xf32>
    %158 = arith.addf %157, %156 : vector<4x32xf32>
    %159 = arith.divf %157, %158 : vector<4x32xf32>
    %160 = vector.extract_strided_slice %147 {offsets = [0, 64], sizes = [4, 32], strides = [1, 1]} : vector<4x128xf32> to vector<4x32xf32>
    %161 = math.tanh %160 : vector<4x32xf32>
    %162 = vector.extract_strided_slice %147 {offsets = [0, 96], sizes = [4, 32], strides = [1, 1]} : vector<4x128xf32> to vector<4x32xf32>
    %163 = arith.negf %162 : vector<4x32xf32>
    %164 = math.exp %163 : vector<4x32xf32>
    %cst_62 = arith.constant 1.000000e+00 : f32
    %165 = vector.broadcast %cst_62 : f32 to vector<4x32xf32>
    %166 = arith.addf %165, %164 : vector<4x32xf32>
    %167 = arith.divf %165, %166 : vector<4x32xf32>
    %168 = arith.mulf %159, %118 : vector<4x32xf32>
    %169 = arith.mulf %153, %161 : vector<4x32xf32>
    %170 = arith.addf %168, %169 : vector<4x32xf32>
    %171 = math.tanh %170 : vector<4x32xf32>
    %172 = arith.mulf %167, %171 : vector<4x32xf32>
    %c3 = arith.constant 3 : index
    %c0_63 = arith.constant 0 : index
    %c0_64 = arith.constant 0 : index
    %173 = vector.load %arg1[%c3, %c0_63, %c0_64] : memref<8x4x6xf32, #tpu.memory_space<vmem>>, vector<1x4x6xf32>
    %174 = vector.shape_cast %173 : vector<1x4x6xf32> to vector<4x6xf32>
    %cst_65 = arith.constant dense<0.000000e+00> : vector<4x6xf32>
    %175 = tpu.matmul %174, %0, %cst_65 {dimension_numbers = #tpu.dot_dimension_numbers<[1], [0], [0], [1], [0, 0, 1, 1], [], []>} : vector<4x6xf32>, vector<6x6xf32>, vector<4x6xf32> -> vector<4x6xf32>
    %cst_66 = arith.constant dense<0.000000e+00> : vector<4x6xf32>
    %176 = tpu.matmul %139, %1, %cst_66 {dimension_numbers = #tpu.dot_dimension_numbers<[1], [0], [0], [1], [0, 0, 1, 1], [], []>} : vector<4x6xf32>, vector<6x6xf32>, vector<4x6xf32> -> vector<4x6xf32>
    %177 = arith.addf %175, %176 : vector<4x6xf32>
    %178 = arith.addf %177, %7 : vector<4x6xf32>
    %179 = math.tanh %178 : vector<4x6xf32>
    %cst_67 = arith.constant dense<0.000000e+00> : vector<4x6xf32>
    %180 = tpu.matmul %179, %2, %cst_67 {dimension_numbers = #tpu.dot_dimension_numbers<[1], [0], [0], [1], [0, 0, 1, 1], [], []>} : vector<4x6xf32>, vector<6x6xf32>, vector<4x6xf32> -> vector<4x6xf32>
    %181 = arith.addf %180, %10 : vector<4x6xf32>
    %cst_68 = arith.constant dense<0xFF800000> : vector<4xf32>
    %182 = vector.multi_reduction <maximumf>, %181, %cst_68 [1] : vector<4x6xf32> to vector<4xf32>
    %183 = vector.shape_cast %182 : vector<4xf32> to vector<4x1xf32>
    %184 = vector.broadcast %183 : vector<4x1xf32> to vector<4x6xf32>
    %185 = arith.subf %181, %184 : vector<4x6xf32>
    %186 = math.exp %185 : vector<4x6xf32>
    %cst_69 = arith.constant dense<0.000000e+00> : vector<4xf32>
    %187 = vector.multi_reduction <add>, %186, %cst_69 [1] : vector<4x6xf32> to vector<4xf32>
    %188 = vector.shape_cast %187 : vector<4xf32> to vector<4x1xf32>
    %189 = tpu.reciprocal %188 {approx = true} : vector<4x1xf32> -> vector<4x1xf32>
    %190 = vector.broadcast %189 : vector<4x1xf32> to vector<4x6xf32>
    %191 = arith.mulf %186, %190 : vector<4x6xf32>
    %192 = arith.mulf %191, %174 : vector<4x6xf32>
    %c0_70 = arith.constant 0 : index
    %c3_71 = arith.constant 3 : index
    %c0_72 = arith.constant 0 : index
    %193 = vector.load %arg15[%c0_70, %c3_71, %c0_72] : memref<4x8x6xf32, #tpu.memory_space<vmem>>, vector<4x1x6xf32>
    %194 = vector.shape_cast %193 : vector<4x1x6xf32> to vector<4x6xf32>
    %195 = vector.shape_cast %191 : vector<4x6xf32> to vector<4x1x6xf32>
    tpu.vector_store %arg15[%c0_70, %c3_71, %c0_72], %195 {strides = array<i32>} : memref<4x8x6xf32, #tpu.memory_space<vmem>>, vector<4x1x6xf32>,
    %cst_73 = arith.constant dense<0.000000e+00> : vector<4x128xf32>
    %196 = tpu.matmul %192, %3, %cst_73 {dimension_numbers = #tpu.dot_dimension_numbers<[1], [0], [0], [1], [0, 0, 1, 1], [], []>} : vector<4x6xf32>, vector<6x128xf32>, vector<4x128xf32> -> vector<4x128xf32>
    %cst_74 = arith.constant dense<0.000000e+00> : vector<4x128xf32>
    %197 = tpu.matmul %172, %4, %cst_74 {dimension_numbers = #tpu.dot_dimension_numbers<[1], [0], [0], [1], [0, 0, 1, 1], [], []>} : vector<4x32xf32>, vector<32x128xf32>, vector<4x128xf32> -> vector<4x128xf32>
    %198 = arith.addf %196, %197 : vector<4x128xf32>
    %199 = arith.addf %198, %13 : vector<4x128xf32>
    %200 = vector.extract_strided_slice %199 {offsets = [0, 0], sizes = [4, 32], strides = [1, 1]} : vector<4x128xf32> to vector<4x32xf32>
    %201 = arith.negf %200 : vector<4x32xf32>
    %202 = math.exp %201 : vector<4x32xf32>
    %cst_75 = arith.constant 1.000000e+00 : f32
    %203 = vector.broadcast %cst_75 : f32 to vector<4x32xf32>
    %204 = arith.addf %203, %202 : vector<4x32xf32>
    %205 = arith.divf %203, %204 : vector<4x32xf32>
    %206 = vector.extract_strided_slice %199 {offsets = [0, 32], sizes = [4, 32], strides = [1, 1]} : vector<4x128xf32> to vector<4x32xf32>
    %207 = arith.negf %206 : vector<4x32xf32>
    %208 = math.exp %207 : vector<4x32xf32>
    %cst_76 = arith.constant 1.000000e+00 : f32
    %209 = vector.broadcast %cst_76 : f32 to vector<4x32xf32>
    %210 = arith.addf %209, %208 : vector<4x32xf32>
    %211 = arith.divf %209, %210 : vector<4x32xf32>
    %212 = vector.extract_strided_slice %199 {offsets = [0, 64], sizes = [4, 32], strides = [1, 1]} : vector<4x128xf32> to vector<4x32xf32>
    %213 = math.tanh %212 : vector<4x32xf32>
    %214 = vector.extract_strided_slice %199 {offsets = [0, 96], sizes = [4, 32], strides = [1, 1]} : vector<4x128xf32> to vector<4x32xf32>
    %215 = arith.negf %214 : vector<4x32xf32>
    %216 = math.exp %215 : vector<4x32xf32>
    %cst_77 = arith.constant 1.000000e+00 : f32
    %217 = vector.broadcast %cst_77 : f32 to vector<4x32xf32>
    %218 = arith.addf %217, %216 : vector<4x32xf32>
    %219 = arith.divf %217, %218 : vector<4x32xf32>
    %220 = arith.mulf %211, %170 : vector<4x32xf32>
    %221 = arith.mulf %205, %213 : vector<4x32xf32>
    %222 = arith.addf %220, %221 : vector<4x32xf32>
    %223 = math.tanh %222 : vector<4x32xf32>
    %224 = arith.mulf %219, %223 : vector<4x32xf32>
    %c4 = arith.constant 4 : index
    %c0_78 = arith.constant 0 : index
    %c0_79 = arith.constant 0 : index
    %225 = vector.load %arg1[%c4, %c0_78, %c0_79] : memref<8x4x6xf32, #tpu.memory_space<vmem>>, vector<1x4x6xf32>
    %226 = vector.shape_cast %225 : vector<1x4x6xf32> to vector<4x6xf32>
    %cst_80 = arith.constant dense<0.000000e+00> : vector<4x6xf32>
    %227 = tpu.matmul %226, %0, %cst_80 {dimension_numbers = #tpu.dot_dimension_numbers<[1], [0], [0], [1], [0, 0, 1, 1], [], []>} : vector<4x6xf32>, vector<6x6xf32>, vector<4x6xf32> -> vector<4x6xf32>
    %cst_81 = arith.constant dense<0.000000e+00> : vector<4x6xf32>
    %228 = tpu.matmul %191, %1, %cst_81 {dimension_numbers = #tpu.dot_dimension_numbers<[1], [0], [0], [1], [0, 0, 1, 1], [], []>} : vector<4x6xf32>, vector<6x6xf32>, vector<4x6xf32> -> vector<4x6xf32>
    %229 = arith.addf %227, %228 : vector<4x6xf32>
    %230 = arith.addf %229, %7 : vector<4x6xf32>
    %231 = math.tanh %230 : vector<4x6xf32>
    %cst_82 = arith.constant dense<0.000000e+00> : vector<4x6xf32>
    %232 = tpu.matmul %231, %2, %cst_82 {dimension_numbers = #tpu.dot_dimension_numbers<[1], [0], [0], [1], [0, 0, 1, 1], [], []>} : vector<4x6xf32>, vector<6x6xf32>, vector<4x6xf32> -> vector<4x6xf32>
    %233 = arith.addf %232, %10 : vector<4x6xf32>
    %cst_83 = arith.constant dense<0xFF800000> : vector<4xf32>
    %234 = vector.multi_reduction <maximumf>, %233, %cst_83 [1] : vector<4x6xf32> to vector<4xf32>
    %235 = vector.shape_cast %234 : vector<4xf32> to vector<4x1xf32>
    %236 = vector.broadcast %235 : vector<4x1xf32> to vector<4x6xf32>
    %237 = arith.subf %233, %236 : vector<4x6xf32>
    %238 = math.exp %237 : vector<4x6xf32>
    %cst_84 = arith.constant dense<0.000000e+00> : vector<4xf32>
    %239 = vector.multi_reduction <add>, %238, %cst_84 [1] : vector<4x6xf32> to vector<4xf32>
    %240 = vector.shape_cast %239 : vector<4xf32> to vector<4x1xf32>
    %241 = tpu.reciprocal %240 {approx = true} : vector<4x1xf32> -> vector<4x1xf32>
    %242 = vector.broadcast %241 : vector<4x1xf32> to vector<4x6xf32>
    %243 = arith.mulf %238, %242 : vector<4x6xf32>
    %244 = arith.mulf %243, %226 : vector<4x6xf32>
    %c0_85 = arith.constant 0 : index
    %c4_86 = arith.constant 4 : index
    %c0_87 = arith.constant 0 : index
    %245 = vector.load %arg15[%c0_85, %c4_86, %c0_87] : memref<4x8x6xf32, #tpu.memory_space<vmem>>, vector<4x1x6xf32>
    %246 = vector.shape_cast %245 : vector<4x1x6xf32> to vector<4x6xf32>
    %247 = vector.shape_cast %243 : vector<4x6xf32> to vector<4x1x6xf32>
    tpu.vector_store %arg15[%c0_85, %c4_86, %c0_87], %247 {strides = array<i32>} : memref<4x8x6xf32, #tpu.memory_space<vmem>>, vector<4x1x6xf32>,
    %cst_88 = arith.constant dense<0.000000e+00> : vector<4x128xf32>
    %248 = tpu.matmul %244, %3, %cst_88 {dimension_numbers = #tpu.dot_dimension_numbers<[1], [0], [0], [1], [0, 0, 1, 1], [], []>} : vector<4x6xf32>, vector<6x128xf32>, vector<4x128xf32> -> vector<4x128xf32>
    %cst_89 = arith.constant dense<0.000000e+00> : vector<4x128xf32>
    %249 = tpu.matmul %224, %4, %cst_89 {dimension_numbers = #tpu.dot_dimension_numbers<[1], [0], [0], [1], [0, 0, 1, 1], [], []>} : vector<4x32xf32>, vector<32x128xf32>, vector<4x128xf32> -> vector<4x128xf32>
    %250 = arith.addf %248, %249 : vector<4x128xf32>
    %251 = arith.addf %250, %13 : vector<4x128xf32>
    %252 = vector.extract_strided_slice %251 {offsets = [0, 0], sizes = [4, 32], strides = [1, 1]} : vector<4x128xf32> to vector<4x32xf32>
    %253 = arith.negf %252 : vector<4x32xf32>
    %254 = math.exp %253 : vector<4x32xf32>
    %cst_90 = arith.constant 1.000000e+00 : f32
    %255 = vector.broadcast %cst_90 : f32 to vector<4x32xf32>
    %256 = arith.addf %255, %254 : vector<4x32xf32>
    %257 = arith.divf %255, %256 : vector<4x32xf32>
    %258 = vector.extract_strided_slice %251 {offsets = [0, 32], sizes = [4, 32], strides = [1, 1]} : vector<4x128xf32> to vector<4x32xf32>
    %259 = arith.negf %258 : vector<4x32xf32>
    %260 = math.exp %259 : vector<4x32xf32>
    %cst_91 = arith.constant 1.000000e+00 : f32
    %261 = vector.broadcast %cst_91 : f32 to vector<4x32xf32>
    %262 = arith.addf %261, %260 : vector<4x32xf32>
    %263 = arith.divf %261, %262 : vector<4x32xf32>
    %264 = vector.extract_strided_slice %251 {offsets = [0, 64], sizes = [4, 32], strides = [1, 1]} : vector<4x128xf32> to vector<4x32xf32>
    %265 = math.tanh %264 : vector<4x32xf32>
    %266 = vector.extract_strided_slice %251 {offsets = [0, 96], sizes = [4, 32], strides = [1, 1]} : vector<4x128xf32> to vector<4x32xf32>
    %267 = arith.negf %266 : vector<4x32xf32>
    %268 = math.exp %267 : vector<4x32xf32>
    %cst_92 = arith.constant 1.000000e+00 : f32
    %269 = vector.broadcast %cst_92 : f32 to vector<4x32xf32>
    %270 = arith.addf %269, %268 : vector<4x32xf32>
    %271 = arith.divf %269, %270 : vector<4x32xf32>
    %272 = arith.mulf %263, %222 : vector<4x32xf32>
    %273 = arith.mulf %257, %265 : vector<4x32xf32>
    %274 = arith.addf %272, %273 : vector<4x32xf32>
    %275 = math.tanh %274 : vector<4x32xf32>
    %276 = arith.mulf %271, %275 : vector<4x32xf32>
    %c5 = arith.constant 5 : index
    %c0_93 = arith.constant 0 : index
    %c0_94 = arith.constant 0 : index
    %277 = vector.load %arg1[%c5, %c0_93, %c0_94] : memref<8x4x6xf32, #tpu.memory_space<vmem>>, vector<1x4x6xf32>
    %278 = vector.shape_cast %277 : vector<1x4x6xf32> to vector<4x6xf32>
    %cst_95 = arith.constant dense<0.000000e+00> : vector<4x6xf32>
    %279 = tpu.matmul %278, %0, %cst_95 {dimension_numbers = #tpu.dot_dimension_numbers<[1], [0], [0], [1], [0, 0, 1, 1], [], []>} : vector<4x6xf32>, vector<6x6xf32>, vector<4x6xf32> -> vector<4x6xf32>
    %cst_96 = arith.constant dense<0.000000e+00> : vector<4x6xf32>
    %280 = tpu.matmul %243, %1, %cst_96 {dimension_numbers = #tpu.dot_dimension_numbers<[1], [0], [0], [1], [0, 0, 1, 1], [], []>} : vector<4x6xf32>, vector<6x6xf32>, vector<4x6xf32> -> vector<4x6xf32>
    %281 = arith.addf %279, %280 : vector<4x6xf32>
    %282 = arith.addf %281, %7 : vector<4x6xf32>
    %283 = math.tanh %282 : vector<4x6xf32>
    %cst_97 = arith.constant dense<0.000000e+00> : vector<4x6xf32>
    %284 = tpu.matmul %283, %2, %cst_97 {dimension_numbers = #tpu.dot_dimension_numbers<[1], [0], [0], [1], [0, 0, 1, 1], [], []>} : vector<4x6xf32>, vector<6x6xf32>, vector<4x6xf32> -> vector<4x6xf32>
    %285 = arith.addf %284, %10 : vector<4x6xf32>
    %cst_98 = arith.constant dense<0xFF800000> : vector<4xf32>
    %286 = vector.multi_reduction <maximumf>, %285, %cst_98 [1] : vector<4x6xf32> to vector<4xf32>
    %287 = vector.shape_cast %286 : vector<4xf32> to vector<4x1xf32>
    %288 = vector.broadcast %287 : vector<4x1xf32> to vector<4x6xf32>
    %289 = arith.subf %285, %288 : vector<4x6xf32>
    %290 = math.exp %289 : vector<4x6xf32>
    %cst_99 = arith.constant dense<0.000000e+00> : vector<4xf32>
    %291 = vector.multi_reduction <add>, %290, %cst_99 [1] : vector<4x6xf32> to vector<4xf32>
    %292 = vector.shape_cast %291 : vector<4xf32> to vector<4x1xf32>
    %293 = tpu.reciprocal %292 {approx = true} : vector<4x1xf32> -> vector<4x1xf32>
    %294 = vector.broadcast %293 : vector<4x1xf32> to vector<4x6xf32>
    %295 = arith.mulf %290, %294 : vector<4x6xf32>
    %296 = arith.mulf %295, %278 : vector<4x6xf32>
    %c0_100 = arith.constant 0 : index
    %c5_101 = arith.constant 5 : index
    %c0_102 = arith.constant 0 : index
    %297 = vector.load %arg15[%c0_100, %c5_101, %c0_102] : memref<4x8x6xf32, #tpu.memory_space<vmem>>, vector<4x1x6xf32>
    %298 = vector.shape_cast %297 : vector<4x1x6xf32> to vector<4x6xf32>
    %299 = vector.shape_cast %295 : vector<4x6xf32> to vector<4x1x6xf32>
    tpu.vector_store %arg15[%c0_100, %c5_101, %c0_102], %299 {strides = array<i32>} : memref<4x8x6xf32, #tpu.memory_space<vmem>>, vector<4x1x6xf32>,
    %cst_103 = arith.constant dense<0.000000e+00> : vector<4x128xf32>
    %300 = tpu.matmul %296, %3, %cst_103 {dimension_numbers = #tpu.dot_dimension_numbers<[1], [0], [0], [1], [0, 0, 1, 1], [], []>} : vector<4x6xf32>, vector<6x128xf32>, vector<4x128xf32> -> vector<4x128xf32>
    %cst_104 = arith.constant dense<0.000000e+00> : vector<4x128xf32>
    %301 = tpu.matmul %276, %4, %cst_104 {dimension_numbers = #tpu.dot_dimension_numbers<[1], [0], [0], [1], [0, 0, 1, 1], [], []>} : vector<4x32xf32>, vector<32x128xf32>, vector<4x128xf32> -> vector<4x128xf32>
    %302 = arith.addf %300, %301 : vector<4x128xf32>
    %303 = arith.addf %302, %13 : vector<4x128xf32>
    %304 = vector.extract_strided_slice %303 {offsets = [0, 0], sizes = [4, 32], strides = [1, 1]} : vector<4x128xf32> to vector<4x32xf32>
    %305 = arith.negf %304 : vector<4x32xf32>
    %306 = math.exp %305 : vector<4x32xf32>
    %cst_105 = arith.constant 1.000000e+00 : f32
    %307 = vector.broadcast %cst_105 : f32 to vector<4x32xf32>
    %308 = arith.addf %307, %306 : vector<4x32xf32>
    %309 = arith.divf %307, %308 : vector<4x32xf32>
    %310 = vector.extract_strided_slice %303 {offsets = [0, 32], sizes = [4, 32], strides = [1, 1]} : vector<4x128xf32> to vector<4x32xf32>
    %311 = arith.negf %310 : vector<4x32xf32>
    %312 = math.exp %311 : vector<4x32xf32>
    %cst_106 = arith.constant 1.000000e+00 : f32
    %313 = vector.broadcast %cst_106 : f32 to vector<4x32xf32>
    %314 = arith.addf %313, %312 : vector<4x32xf32>
    %315 = arith.divf %313, %314 : vector<4x32xf32>
    %316 = vector.extract_strided_slice %303 {offsets = [0, 64], sizes = [4, 32], strides = [1, 1]} : vector<4x128xf32> to vector<4x32xf32>
    %317 = math.tanh %316 : vector<4x32xf32>
    %318 = vector.extract_strided_slice %303 {offsets = [0, 96], sizes = [4, 32], strides = [1, 1]} : vector<4x128xf32> to vector<4x32xf32>
    %319 = arith.negf %318 : vector<4x32xf32>
    %320 = math.exp %319 : vector<4x32xf32>
    %cst_107 = arith.constant 1.000000e+00 : f32
    %321 = vector.broadcast %cst_107 : f32 to vector<4x32xf32>
    %322 = arith.addf %321, %320 : vector<4x32xf32>
    %323 = arith.divf %321, %322 : vector<4x32xf32>
    %324 = arith.mulf %315, %274 : vector<4x32xf32>
    %325 = arith.mulf %309, %317 : vector<4x32xf32>
    %326 = arith.addf %324, %325 : vector<4x32xf32>
    %327 = math.tanh %326 : vector<4x32xf32>
    %328 = arith.mulf %323, %327 : vector<4x32xf32>
    %c6 = arith.constant 6 : index
    %c0_108 = arith.constant 0 : index
    %c0_109 = arith.constant 0 : index
    %329 = vector.load %arg1[%c6, %c0_108, %c0_109] : memref<8x4x6xf32, #tpu.memory_space<vmem>>, vector<1x4x6xf32>
    %330 = vector.shape_cast %329 : vector<1x4x6xf32> to vector<4x6xf32>
    %cst_110 = arith.constant dense<0.000000e+00> : vector<4x6xf32>
    %331 = tpu.matmul %330, %0, %cst_110 {dimension_numbers = #tpu.dot_dimension_numbers<[1], [0], [0], [1], [0, 0, 1, 1], [], []>} : vector<4x6xf32>, vector<6x6xf32>, vector<4x6xf32> -> vector<4x6xf32>
    %cst_111 = arith.constant dense<0.000000e+00> : vector<4x6xf32>
    %332 = tpu.matmul %295, %1, %cst_111 {dimension_numbers = #tpu.dot_dimension_numbers<[1], [0], [0], [1], [0, 0, 1, 1], [], []>} : vector<4x6xf32>, vector<6x6xf32>, vector<4x6xf32> -> vector<4x6xf32>
    %333 = arith.addf %331, %332 : vector<4x6xf32>
    %334 = arith.addf %333, %7 : vector<4x6xf32>
    %335 = math.tanh %334 : vector<4x6xf32>
    %cst_112 = arith.constant dense<0.000000e+00> : vector<4x6xf32>
    %336 = tpu.matmul %335, %2, %cst_112 {dimension_numbers = #tpu.dot_dimension_numbers<[1], [0], [0], [1], [0, 0, 1, 1], [], []>} : vector<4x6xf32>, vector<6x6xf32>, vector<4x6xf32> -> vector<4x6xf32>
    %337 = arith.addf %336, %10 : vector<4x6xf32>
    %cst_113 = arith.constant dense<0xFF800000> : vector<4xf32>
    %338 = vector.multi_reduction <maximumf>, %337, %cst_113 [1] : vector<4x6xf32> to vector<4xf32>
    %339 = vector.shape_cast %338 : vector<4xf32> to vector<4x1xf32>
    %340 = vector.broadcast %339 : vector<4x1xf32> to vector<4x6xf32>
    %341 = arith.subf %337, %340 : vector<4x6xf32>
    %342 = math.exp %341 : vector<4x6xf32>
    %cst_114 = arith.constant dense<0.000000e+00> : vector<4xf32>
    %343 = vector.multi_reduction <add>, %342, %cst_114 [1] : vector<4x6xf32> to vector<4xf32>
    %344 = vector.shape_cast %343 : vector<4xf32> to vector<4x1xf32>
    %345 = tpu.reciprocal %344 {approx = true} : vector<4x1xf32> -> vector<4x1xf32>
    %346 = vector.broadcast %345 : vector<4x1xf32> to vector<4x6xf32>
    %347 = arith.mulf %342, %346 : vector<4x6xf32>
    %348 = arith.mulf %347, %330 : vector<4x6xf32>
    %c0_115 = arith.constant 0 : index
    %c6_116 = arith.constant 6 : index
    %c0_117 = arith.constant 0 : index
    %349 = vector.load %arg15[%c0_115, %c6_116, %c0_117] : memref<4x8x6xf32, #tpu.memory_space<vmem>>, vector<4x1x6xf32>
    %350 = vector.shape_cast %349 : vector<4x1x6xf32> to vector<4x6xf32>
    %351 = vector.shape_cast %347 : vector<4x6xf32> to vector<4x1x6xf32>
    tpu.vector_store %arg15[%c0_115, %c6_116, %c0_117], %351 {strides = array<i32>} : memref<4x8x6xf32, #tpu.memory_space<vmem>>, vector<4x1x6xf32>,
    %cst_118 = arith.constant dense<0.000000e+00> : vector<4x128xf32>
    %352 = tpu.matmul %348, %3, %cst_118 {dimension_numbers = #tpu.dot_dimension_numbers<[1], [0], [0], [1], [0, 0, 1, 1], [], []>} : vector<4x6xf32>, vector<6x128xf32>, vector<4x128xf32> -> vector<4x128xf32>
    %cst_119 = arith.constant dense<0.000000e+00> : vector<4x128xf32>
    %353 = tpu.matmul %328, %4, %cst_119 {dimension_numbers = #tpu.dot_dimension_numbers<[1], [0], [0], [1], [0, 0, 1, 1], [], []>} : vector<4x32xf32>, vector<32x128xf32>, vector<4x128xf32> -> vector<4x128xf32>
    %354 = arith.addf %352, %353 : vector<4x128xf32>
    %355 = arith.addf %354, %13 : vector<4x128xf32>
    %356 = vector.extract_strided_slice %355 {offsets = [0, 0], sizes = [4, 32], strides = [1, 1]} : vector<4x128xf32> to vector<4x32xf32>
    %357 = arith.negf %356 : vector<4x32xf32>
    %358 = math.exp %357 : vector<4x32xf32>
    %cst_120 = arith.constant 1.000000e+00 : f32
    %359 = vector.broadcast %cst_120 : f32 to vector<4x32xf32>
    %360 = arith.addf %359, %358 : vector<4x32xf32>
    %361 = arith.divf %359, %360 : vector<4x32xf32>
    %362 = vector.extract_strided_slice %355 {offsets = [0, 32], sizes = [4, 32], strides = [1, 1]} : vector<4x128xf32> to vector<4x32xf32>
    %363 = arith.negf %362 : vector<4x32xf32>
    %364 = math.exp %363 : vector<4x32xf32>
    %cst_121 = arith.constant 1.000000e+00 : f32
    %365 = vector.broadcast %cst_121 : f32 to vector<4x32xf32>
    %366 = arith.addf %365, %364 : vector<4x32xf32>
    %367 = arith.divf %365, %366 : vector<4x32xf32>
    %368 = vector.extract_strided_slice %355 {offsets = [0, 64], sizes = [4, 32], strides = [1, 1]} : vector<4x128xf32> to vector<4x32xf32>
    %369 = math.tanh %368 : vector<4x32xf32>
    %370 = vector.extract_strided_slice %355 {offsets = [0, 96], sizes = [4, 32], strides = [1, 1]} : vector<4x128xf32> to vector<4x32xf32>
    %371 = arith.negf %370 : vector<4x32xf32>
    %372 = math.exp %371 : vector<4x32xf32>
    %cst_122 = arith.constant 1.000000e+00 : f32
    %373 = vector.broadcast %cst_122 : f32 to vector<4x32xf32>
    %374 = arith.addf %373, %372 : vector<4x32xf32>
    %375 = arith.divf %373, %374 : vector<4x32xf32>
    %376 = arith.mulf %367, %326 : vector<4x32xf32>
    %377 = arith.mulf %361, %369 : vector<4x32xf32>
    %378 = arith.addf %376, %377 : vector<4x32xf32>
    %379 = math.tanh %378 : vector<4x32xf32>
    %380 = arith.mulf %375, %379 : vector<4x32xf32>
    %c7 = arith.constant 7 : index
    %c0_123 = arith.constant 0 : index
    %c0_124 = arith.constant 0 : index
    %381 = vector.load %arg1[%c7, %c0_123, %c0_124] : memref<8x4x6xf32, #tpu.memory_space<vmem>>, vector<1x4x6xf32>
    %382 = vector.shape_cast %381 : vector<1x4x6xf32> to vector<4x6xf32>
    %cst_125 = arith.constant dense<0.000000e+00> : vector<4x6xf32>
    %383 = tpu.matmul %382, %0, %cst_125 {dimension_numbers = #tpu.dot_dimension_numbers<[1], [0], [0], [1], [0, 0, 1, 1], [], []>} : vector<4x6xf32>, vector<6x6xf32>, vector<4x6xf32> -> vector<4x6xf32>
    %cst_126 = arith.constant dense<0.000000e+00> : vector<4x6xf32>
    %384 = tpu.matmul %347, %1, %cst_126 {dimension_numbers = #tpu.dot_dimension_numbers<[1], [0], [0], [1], [0, 0, 1, 1], [], []>} : vector<4x6xf32>, vector<6x6xf32>, vector<4x6xf32> -> vector<4x6xf32>
    %385 = arith.addf %383, %384 : vector<4x6xf32>
    %386 = arith.addf %385, %7 : vector<4x6xf32>
    %387 = math.tanh %386 : vector<4x6xf32>
    %cst_127 = arith.constant dense<0.000000e+00> : vector<4x6xf32>
    %388 = tpu.matmul %387, %2, %cst_127 {dimension_numbers = #tpu.dot_dimension_numbers<[1], [0], [0], [1], [0, 0, 1, 1], [], []>} : vector<4x6xf32>, vector<6x6xf32>, vector<4x6xf32> -> vector<4x6xf32>
    %389 = arith.addf %388, %10 : vector<4x6xf32>
    %cst_128 = arith.constant dense<0xFF800000> : vector<4xf32>
    %390 = vector.multi_reduction <maximumf>, %389, %cst_128 [1] : vector<4x6xf32> to vector<4xf32>
    %391 = vector.shape_cast %390 : vector<4xf32> to vector<4x1xf32>
    %392 = vector.broadcast %391 : vector<4x1xf32> to vector<4x6xf32>
    %393 = arith.subf %389, %392 : vector<4x6xf32>
    %394 = math.exp %393 : vector<4x6xf32>
    %cst_129 = arith.constant dense<0.000000e+00> : vector<4xf32>
    %395 = vector.multi_reduction <add>, %394, %cst_129 [1] : vector<4x6xf32> to vector<4xf32>
    %396 = vector.shape_cast %395 : vector<4xf32> to vector<4x1xf32>
    %397 = tpu.reciprocal %396 {approx = true} : vector<4x1xf32> -> vector<4x1xf32>
    %398 = vector.broadcast %397 : vector<4x1xf32> to vector<4x6xf32>
    %399 = arith.mulf %394, %398 : vector<4x6xf32>
    %400 = arith.mulf %399, %382 : vector<4x6xf32>
    %c0_130 = arith.constant 0 : index
    %c7_131 = arith.constant 7 : index
    %c0_132 = arith.constant 0 : index
    %401 = vector.load %arg15[%c0_130, %c7_131, %c0_132] : memref<4x8x6xf32, #tpu.memory_space<vmem>>, vector<4x1x6xf32>
    %402 = vector.shape_cast %401 : vector<4x1x6xf32> to vector<4x6xf32>
    %403 = vector.shape_cast %399 : vector<4x6xf32> to vector<4x1x6xf32>
    tpu.vector_store %arg15[%c0_130, %c7_131, %c0_132], %403 {strides = array<i32>} : memref<4x8x6xf32, #tpu.memory_space<vmem>>, vector<4x1x6xf32>,
    %cst_133 = arith.constant dense<0.000000e+00> : vector<4x128xf32>
    %404 = tpu.matmul %400, %3, %cst_133 {dimension_numbers = #tpu.dot_dimension_numbers<[1], [0], [0], [1], [0, 0, 1, 1], [], []>} : vector<4x6xf32>, vector<6x128xf32>, vector<4x128xf32> -> vector<4x128xf32>
    %cst_134 = arith.constant dense<0.000000e+00> : vector<4x128xf32>
    %405 = tpu.matmul %380, %4, %cst_134 {dimension_numbers = #tpu.dot_dimension_numbers<[1], [0], [0], [1], [0, 0, 1, 1], [], []>} : vector<4x32xf32>, vector<32x128xf32>, vector<4x128xf32> -> vector<4x128xf32>
    %406 = arith.addf %404, %405 : vector<4x128xf32>
    %407 = arith.addf %406, %13 : vector<4x128xf32>
    %408 = vector.extract_strided_slice %407 {offsets = [0, 0], sizes = [4, 32], strides = [1, 1]} : vector<4x128xf32> to vector<4x32xf32>
    %409 = arith.negf %408 : vector<4x32xf32>
    %410 = math.exp %409 : vector<4x32xf32>
    %cst_135 = arith.constant 1.000000e+00 : f32
    %411 = vector.broadcast %cst_135 : f32 to vector<4x32xf32>
    %412 = arith.addf %411, %410 : vector<4x32xf32>
    %413 = arith.divf %411, %412 : vector<4x32xf32>
    %414 = vector.extract_strided_slice %407 {offsets = [0, 32], sizes = [4, 32], strides = [1, 1]} : vector<4x128xf32> to vector<4x32xf32>
    %415 = arith.negf %414 : vector<4x32xf32>
    %416 = math.exp %415 : vector<4x32xf32>
    %cst_136 = arith.constant 1.000000e+00 : f32
    %417 = vector.broadcast %cst_136 : f32 to vector<4x32xf32>
    %418 = arith.addf %417, %416 : vector<4x32xf32>
    %419 = arith.divf %417, %418 : vector<4x32xf32>
    %420 = vector.extract_strided_slice %407 {offsets = [0, 64], sizes = [4, 32], strides = [1, 1]} : vector<4x128xf32> to vector<4x32xf32>
    %421 = math.tanh %420 : vector<4x32xf32>
    %422 = vector.extract_strided_slice %407 {offsets = [0, 96], sizes = [4, 32], strides = [1, 1]} : vector<4x128xf32> to vector<4x32xf32>
    %423 = arith.negf %422 : vector<4x32xf32>
    %424 = math.exp %423 : vector<4x32xf32>
    %cst_137 = arith.constant 1.000000e+00 : f32
    %425 = vector.broadcast %cst_137 : f32 to vector<4x32xf32>
    %426 = arith.addf %425, %424 : vector<4x32xf32>
    %427 = arith.divf %425, %426 : vector<4x32xf32>
    %428 = arith.mulf %419, %378 : vector<4x32xf32>
    %429 = arith.mulf %413, %421 : vector<4x32xf32>
    %430 = arith.addf %428, %429 : vector<4x32xf32>
    %431 = math.tanh %430 : vector<4x32xf32>
    %432 = arith.mulf %427, %431 : vector<4x32xf32>
    %c0_138 = arith.constant 0 : index
    %c0_139 = arith.constant 0 : index
    %433 = vector.load %arg10[%c0_138, %c0_139] : memref<32x32xf32, #tpu.memory_space<vmem>>, vector<32x32xf32>
    %cst_140 = arith.constant dense<0.000000e+00> : vector<4x32xf32>
    %434 = tpu.matmul %432, %433, %cst_140 {dimension_numbers = #tpu.dot_dimension_numbers<[1], [0], [0], [1], [0, 0, 1, 1], [], []>} : vector<4x32xf32>, vector<32x32xf32>, vector<4x32xf32> -> vector<4x32xf32>
    %c0_141 = arith.constant 0 : index
    %c0_142 = arith.constant 0 : index
    %435 = vector.load %arg11[%c0_141, %c0_142] : memref<1x32xf32, #tpu.memory_space<vmem>>, vector<1x32xf32>
    %436 = vector.broadcast %435 : vector<1x32xf32> to vector<4x32xf32>
    %437 = arith.mulf %432, %436 : vector<4x32xf32>
    %cst_143 = arith.constant dense<0.000000e+00> : vector<4xf32>
    %438 = vector.multi_reduction <add>, %437, %cst_143 [1] : vector<4x32xf32> to vector<4xf32>
    %439 = vector.shape_cast %438 : vector<4xf32> to vector<4x1xf32>
    %440 = arith.mulf %68, %434 : vector<4x32xf32>
    %cst_144 = arith.constant dense<0.000000e+00> : vector<4xf32>
    %441 = vector.multi_reduction <add>, %440, %cst_144 [1] : vector<4x32xf32> to vector<4xf32>
    %442 = vector.shape_cast %441 : vector<4xf32> to vector<4x1xf32>
    %443 = arith.mulf %120, %434 : vector<4x32xf32>
    %cst_145 = arith.constant dense<0.000000e+00> : vector<4xf32>
    %444 = vector.multi_reduction <add>, %443, %cst_145 [1] : vector<4x32xf32> to vector<4xf32>
    %445 = vector.shape_cast %444 : vector<4xf32> to vector<4x1xf32>
    %446 = arith.mulf %172, %434 : vector<4x32xf32>
    %cst_146 = arith.constant dense<0.000000e+00> : vector<4xf32>
    %447 = vector.multi_reduction <add>, %446, %cst_146 [1] : vector<4x32xf32> to vector<4xf32>
    %448 = vector.shape_cast %447 : vector<4xf32> to vector<4x1xf32>
    %449 = arith.mulf %224, %434 : vector<4x32xf32>
    %cst_147 = arith.constant dense<0.000000e+00> : vector<4xf32>
    %450 = vector.multi_reduction <add>, %449, %cst_147 [1] : vector<4x32xf32> to vector<4xf32>
    %451 = vector.shape_cast %450 : vector<4xf32> to vector<4x1xf32>
    %452 = arith.mulf %276, %434 : vector<4x32xf32>
    %cst_148 = arith.constant dense<0.000000e+00> : vector<4xf32>
    %453 = vector.multi_reduction <add>, %452, %cst_148 [1] : vector<4x32xf32> to vector<4xf32>
    %454 = vector.shape_cast %453 : vector<4xf32> to vector<4x1xf32>
    %455 = arith.mulf %328, %434 : vector<4x32xf32>
    %cst_149 = arith.constant dense<0.000000e+00> : vector<4xf32>
    %456 = vector.multi_reduction <add>, %455, %cst_149 [1] : vector<4x32xf32> to vector<4xf32>
    %457 = vector.shape_cast %456 : vector<4xf32> to vector<4x1xf32>
    %458 = arith.mulf %380, %434 : vector<4x32xf32>
    %cst_150 = arith.constant dense<0.000000e+00> : vector<4xf32>
    %459 = vector.multi_reduction <add>, %458, %cst_150 [1] : vector<4x32xf32> to vector<4xf32>
    %460 = vector.shape_cast %459 : vector<4xf32> to vector<4x1xf32>
    %461 = arith.mulf %432, %434 : vector<4x32xf32>
    %cst_151 = arith.constant dense<0.000000e+00> : vector<4xf32>
    %462 = vector.multi_reduction <add>, %461, %cst_151 [1] : vector<4x32xf32> to vector<4xf32>
    %463 = vector.shape_cast %462 : vector<4xf32> to vector<4x1xf32>
    %464 = tpu.concatenate %442, %445, %448, %451, %454, %457, %460, %463 in 1 : vector<4x1xf32>, vector<4x1xf32>, vector<4x1xf32>, vector<4x1xf32>, vector<4x1xf32>, vector<4x1xf32>, vector<4x1xf32>, vector<4x1xf32> -> vector<4x8xf32>
    %465 = vector.broadcast %439 : vector<4x1xf32> to vector<4x8xf32>
    %466 = arith.addf %464, %465 : vector<4x8xf32>
    %cst_152 = arith.constant dense<0xFF800000> : vector<4xf32>
    %467 = vector.multi_reduction <maximumf>, %466, %cst_152 [1] : vector<4x8xf32> to vector<4xf32>
    %468 = vector.shape_cast %467 : vector<4xf32> to vector<4x1xf32>
    %469 = vector.broadcast %468 : vector<4x1xf32> to vector<4x8xf32>
    %470 = arith.subf %466, %469 : vector<4x8xf32>
    %471 = math.exp %470 : vector<4x8xf32>
    %cst_153 = arith.constant dense<0.000000e+00> : vector<4xf32>
    %472 = vector.multi_reduction <add>, %471, %cst_153 [1] : vector<4x8xf32> to vector<4xf32>
    %473 = vector.shape_cast %472 : vector<4xf32> to vector<4x1xf32>
    %474 = tpu.reciprocal %473 {approx = true} : vector<4x1xf32> -> vector<4x1xf32>
    %475 = vector.broadcast %474 : vector<4x1xf32> to vector<4x8xf32>
    %476 = arith.mulf %471, %475 : vector<4x8xf32>
    %c0_154 = arith.constant 0 : index
    %c0_155 = arith.constant 0 : index
    %477 = vector.load %arg16[%c0_154, %c0_155] : memref<4x8xf32, #tpu.memory_space<vmem>>, vector<4x8xf32>
    tpu.vector_store %arg16[%c0_154, %c0_155], %476 {strides = array<i32>} : memref<4x8xf32, #tpu.memory_space<vmem>>, vector<4x8xf32>,
    %478 = vector.extract_strided_slice %476 {offsets = [0, 0], sizes = [4, 1], strides = [1, 1]} : vector<4x8xf32> to vector<4x1xf32>
    %479 = vector.broadcast %478 : vector<4x1xf32> to vector<4x32xf32>
    %480 = arith.mulf %479, %68 : vector<4x32xf32>
    %481 = vector.extract_strided_slice %476 {offsets = [0, 1], sizes = [4, 1], strides = [1, 1]} : vector<4x8xf32> to vector<4x1xf32>
    %482 = vector.broadcast %481 : vector<4x1xf32> to vector<4x32xf32>
    %483 = arith.mulf %482, %120 : vector<4x32xf32>
    %484 = arith.addf %480, %483 : vector<4x32xf32>
    %485 = vector.extract_strided_slice %476 {offsets = [0, 2], sizes = [4, 1], strides = [1, 1]} : vector<4x8xf32> to vector<4x1xf32>
    %486 = vector.broadcast %485 : vector<4x1xf32> to vector<4x32xf32>
    %487 = arith.mulf %486, %172 : vector<4x32xf32>
    %488 = arith.addf %484, %487 : vector<4x32xf32>
    %489 = vector.extract_strided_slice %476 {offsets = [0, 3], sizes = [4, 1], strides = [1, 1]} : vector<4x8xf32> to vector<4x1xf32>
    %490 = vector.broadcast %489 : vector<4x1xf32> to vector<4x32xf32>
    %491 = arith.mulf %490, %224 : vector<4x32xf32>
    %492 = arith.addf %488, %491 : vector<4x32xf32>
    %493 = vector.extract_strided_slice %476 {offsets = [0, 4], sizes = [4, 1], strides = [1, 1]} : vector<4x8xf32> to vector<4x1xf32>
    %494 = vector.broadcast %493 : vector<4x1xf32> to vector<4x32xf32>
    %495 = arith.mulf %494, %276 : vector<4x32xf32>
    %496 = arith.addf %492, %495 : vector<4x32xf32>
    %497 = vector.extract_strided_slice %476 {offsets = [0, 5], sizes = [4, 1], strides = [1, 1]} : vector<4x8xf32> to vector<4x1xf32>
    %498 = vector.broadcast %497 : vector<4x1xf32> to vector<4x32xf32>
    %499 = arith.mulf %498, %328 : vector<4x32xf32>
    %500 = arith.addf %496, %499 : vector<4x32xf32>
    %501 = vector.extract_strided_slice %476 {offsets = [0, 6], sizes = [4, 1], strides = [1, 1]} : vector<4x8xf32> to vector<4x1xf32>
    %502 = vector.broadcast %501 : vector<4x1xf32> to vector<4x32xf32>
    %503 = arith.mulf %502, %380 : vector<4x32xf32>
    %504 = arith.addf %500, %503 : vector<4x32xf32>
    %505 = vector.extract_strided_slice %476 {offsets = [0, 7], sizes = [4, 1], strides = [1, 1]} : vector<4x8xf32> to vector<4x1xf32>
    %506 = vector.broadcast %505 : vector<4x1xf32> to vector<4x32xf32>
    %507 = arith.mulf %506, %432 : vector<4x32xf32>
    %508 = arith.addf %504, %507 : vector<4x32xf32>
    %c0_156 = arith.constant 0 : index
    %c0_157 = arith.constant 0 : index
    %509 = vector.load %arg12[%c0_156, %c0_157] : memref<32x5xf32, #tpu.memory_space<vmem>>, vector<32x5xf32>
    %cst_158 = arith.constant dense<0.000000e+00> : vector<4x5xf32>
    %510 = tpu.matmul %508, %509, %cst_158 {dimension_numbers = #tpu.dot_dimension_numbers<[1], [0], [0], [1], [0, 0, 1, 1], [], []>} : vector<4x32xf32>, vector<32x5xf32>, vector<4x5xf32> -> vector<4x5xf32>
    %c0_159 = arith.constant 0 : index
    %c0_160 = arith.constant 0 : index
    %511 = vector.load %arg13[%c0_159, %c0_160] : memref<1x5xf32, #tpu.memory_space<vmem>>, vector<1x5xf32>
    %512 = vector.broadcast %511 : vector<1x5xf32> to vector<4x5xf32>
    %513 = arith.addf %510, %512 : vector<4x5xf32>
    %c0_161 = arith.constant 0 : index
    %c0_162 = arith.constant 0 : index
    %514 = vector.load %arg14[%c0_161, %c0_162] : memref<4x5xf32, #tpu.memory_space<vmem>>, vector<4x5xf32>
    tpu.vector_store %arg14[%c0_161, %c0_162], %513 {strides = array<i32>} : memref<4x5xf32, #tpu.memory_space<vmem>>, vector<4x5xf32>,
    return
  }
  func.func @transform_0(%arg0: i32) -> (i32, i32, i32) {
    %c0_i32 = arith.constant 0 : i32
    %c0_i32_0 = arith.constant 0 : i32
    %c0_i32_1 = arith.constant 0 : i32
    %c0_i32_2 = arith.constant 0 : i32
    return %c0_i32, %c0_i32_0, %c0_i32_1 : i32, i32, i32
  }
  func.func @transform_1(%arg0: i32) -> (i32, i32) {
    %c0_i32 = arith.constant 0 : i32
    %c0_i32_0 = arith.constant 0 : i32
    %c0_i32_1 = arith.constant 0 : i32
    return %c0_i32, %c0_i32_0 : i32, i32
  }
  func.func @transform_2(%arg0: i32) -> (i32, i32) {
    %c0_i32 = arith.constant 0 : i32
    %c0_i32_0 = arith.constant 0 : i32
    %c0_i32_1 = arith.constant 0 : i32
    return %c0_i32, %c0_i32_0 : i32, i32
  }
  func.func @transform_3(%arg0: i32) -> (i32, i32) {
    %c0_i32 = arith.constant 0 : i32
    %c0_i32_0 = arith.constant 0 : i32
    %c0_i32_1 = arith.constant 0 : i32
    return %c0_i32, %c0_i32_0 : i32, i32
  }
  func.func @transform_4(%arg0: i32) -> (i32, i32) {
    %c0_i32 = arith.constant 0 : i32
    %c0_i32_0 = arith.constant 0 : i32
    %c0_i32_1 = arith.constant 0 : i32
    return %c0_i32, %c0_i32_0 : i32, i32
  }
  func.func @transform_5(%arg0: i32) -> (i32, i32) {
    %c0_i32 = arith.constant 0 : i32
    %c0_i32_0 = arith.constant 0 : i32
    %c0_i32_1 = arith.constant 0 : i32
    return %c0_i32, %c0_i32_0 : i32, i32
  }
  func.func @transform_6(%arg0: i32) -> (i32, i32) {
    %c0_i32 = arith.constant 0 : i32
    %c0_i32_0 = arith.constant 0 : i32
    %c0_i32_1 = arith.constant 0 : i32
    return %c0_i32, %c0_i32_0 : i32, i32
  }
  func.func @transform_7(%arg0: i32) -> (i32, i32) {
    %c0_i32 = arith.constant 0 : i32
    %c0_i32_0 = arith.constant 0 : i32
    %c0_i32_1 = arith.constant 0 : i32
    return %c0_i32, %c0_i32_0 : i32, i32
  }
  func.func @transform_8(%arg0: i32) -> (i32, i32) {
    %c0_i32 = arith.constant 0 : i32
    %c0_i32_0 = arith.constant 0 : i32
    %c0_i32_1 = arith.constant 0 : i32
    return %c0_i32, %c0_i32_0 : i32, i32
  }
  func.func @transform_9(%arg0: i32) -> (i32, i32) {
    %c0_i32 = arith.constant 0 : i32
    %c0_i32_0 = arith.constant 0 : i32
    %c0_i32_1 = arith.constant 0 : i32
    return %c0_i32, %c0_i32_0 : i32, i32
  }
  func.func @transform_10(%arg0: i32) -> (i32, i32) {
    %c0_i32 = arith.constant 0 : i32
    %c0_i32_0 = arith.constant 0 : i32
    %c0_i32_1 = arith.constant 0 : i32
    return %c0_i32, %c0_i32_0 : i32, i32
  }
  func.func @transform_11(%arg0: i32) -> (i32, i32) {
    %c0_i32 = arith.constant 0 : i32
    %c0_i32_0 = arith.constant 0 : i32
    %c0_i32_1 = arith.constant 0 : i32
    return %c0_i32, %c0_i32_0 : i32, i32
  }
  func.func @transform_12(%arg0: i32) -> (i32, i32) {
    %c0_i32 = arith.constant 0 : i32
    %c0_i32_0 = arith.constant 0 : i32
    %c0_i32_1 = arith.constant 0 : i32
    return %c0_i32, %c0_i32_0 : i32, i32
  }
  func.func @transform_13(%arg0: i32) -> (i32, i32) {
    %c0_i32 = arith.constant 0 : i32
    %c0_i32_0 = arith.constant 0 : i32
    %c0_i32_1 = arith.constant 0 : i32
    return %c0_i32, %c0_i32_0 : i32, i32
  }
  func.func @transform_14(%arg0: i32) -> (i32, i32, i32) {
    %c0_i32 = arith.constant 0 : i32
    %c0_i32_0 = arith.constant 0 : i32
    %c0_i32_1 = arith.constant 0 : i32
    %c0_i32_2 = arith.constant 0 : i32
    return %c0_i32, %c0_i32_0, %c0_i32_1 : i32, i32, i32
  }
  func.func @transform_15(%arg0: i32) -> (i32, i32) {
    %c0_i32 = arith.constant 0 : i32
    %c0_i32_0 = arith.constant 0 : i32
    %c0_i32_1 = arith.constant 0 : i32
    return %c0_i32, %c0_i32_0 : i32, i32
  }
}

</mosaic_0001>

<bundles_post_ra>
// kernel: tpu_custom_call.1
= control target key start
LH: loop header
LB: loop body
LE: loop exit
PB: predicated region body
PF: predicated region fallthrough
CT: control target
= control target key end

     0   :  { %21 = vsyncpa [#allocation3], 0  ;;  %vm83_vm0 = vcmask 1045504   ;;  %vm79_vm1 = vcmask 48128   ;;  %v4705_v1 = vmov 0.0   ;;  %s5564_s0 = inlined_call_operand.vmem [shape: f32[8,4,6], index: 0, kind: input, shape index: {}]   ;;  %s5565_s1 = inlined_call_operand.vmem [shape: f32[6,6], index: 1, kind: input, shape index: {}]   ;;  %s5566_s2 = inlined_call_operand.vmem [shape: f32[6,6], index: 2, kind: input, shape index: {}]   ;;  %s5567_s3 = inlined_call_operand.vmem [shape: f32[1,6], index: 3, kind: input, shape index: {}]   ;;  %s5568_s4 = inlined_call_operand.vmem [shape: f32[6,6], index: 4, kind: input, shape index: {}]   ;;  %s5569_s5 = inlined_call_operand.vmem [shape: f32[1,6], index: 5, kind: input, shape index: {}]   ;;  %s5570_s6 = inlined_call_operand.vmem [shape: f32[6,128], index: 6, kind: input, shape index: {}]   ;;  %s5571_s7 = inlined_call_operand.vmem [shape: f32[32,128], index: 7, kind: input, shape index: {}]   ;;  %s5572_s8 = inlined_call_operand.vmem [shape: f32[1,128], index: 8, kind: input, shape index: {}]   ;;  %s5573_s9 = inlined_call_operand.vmem [shape: f32[32,32], index: 9, kind: input, shape index: {}]   ;;  %s5574_s10 = inlined_call_operand.vmem [shape: f32[1,32], index: 10, kind: input, shape index: {}]   ;;  %s5575_s11 = inlined_call_operand.vmem [shape: f32[32,5], index: 11, kind: input, shape index: {}]   ;;  %s5576_s12 = inlined_call_operand.vmem [shape: f32[1,5], index: 12, kind: input, shape index: {}]   ;;  %s5577_s13 = inlined_call_operand.hbm [shape: f32[4,5], index: 13, kind: output, shape index: {0}]   ;;  %s5578_s14 = inlined_call_operand.vmem [shape: f32[4,8,6], index: 14, kind: output, shape index: {1}]   ;;  %s5579_s15 = inlined_call_operand.hbm [shape: f32[4,8], index: 15, kind: output, shape index: {2}]  }
   0x1   :  { %v4805_v0 = vld [vmem:[%s5566_s2] sm:$0x3f]  ;;  %4178 = vmatprep.subr.mxu0 %v4705_v1  ;;  %4183 = vmatprep.subr.mxu1 %v4705_v1 }
   0x2   :  { %v4812_v2 = vld [vmem:[%s5565_s1] sm:$0x3f] }
   0x3   :  { %v4817_v3 = vld [vmem:[%s5564_s0] sm:$0xf] }
   0x4   :  { %22 = vsyncpa [#allocation5], 0  ;;  %4179 = vmatpush3.msk.msra.mxu0 %vm83_vm0, %v4805_v0  ;;  %vm4706_vm2 = vmmov 0   ;;  %4184 = vmatpush3.msk.msra.mxu1 %vm83_vm0, %v4812_v2  ;;  %v4838_v4 = vld [vmem:[%s5568_s4] sm:$0x3f]  ;;  %vm311_vm3 = vcmask 44032   ;;  %v328_v35 = vlaneseq }
   0x5   :  { %4180 = vmatprep.mubr.msk.f32.mxu0 %vm4706_vm2, %v4705_v1  ;;  %4185 = vmatprep.mubr.msk.f32.mxu1 %vm4706_vm2, %v4705_v1  ;;  %v4846_v6 = vld [vmem:[%s5567_s3] ss:$0 sm:$0xff]  ;;  %v54_v24 = vld [vmem:[%s5571_s7 + $0x8] sm:$0xff]  ;;  %v4707_v26 = vmov 0.0|0.0   ;;  %v55_v27 = vld [vmem:[%s5571_s7 + $0x10] sm:$0xff]  ;;  %vm353_vm4 = vcmask 40960  }
   0x6   :  { %4181 = vmatmul.mubr.f32.vlgmr.msra.gmra.mrb[0].mxu0 %v4705_v1  ;;  %4186 = vmatmul.mubr.msk.f32.vlgmr.msra.gmra.mrb[0].mxu1 %vm79_vm1, %v4817_v3  ;;  %v4855_v13 = vld [vmem:[%s5569_s5] ss:$0 sm:$0xff]  ;;  %v56_v28 = vld [vmem:[%s5571_s7 + $0x18] sm:$0xff]  ;;  %v4898_v31 = vld [vmem:[%s5564_s0 + $0x4] sm:$0xf]  ;;  %v329_v37 = vshrl.u32 %v328_v35, 7 }
   0x7   :  { %4188 = vmatprep.subr.mxu0 %v4705_v1  ;;  %4190 = vmatprep.mubr.msk.f32.mxu0 %vm4706_vm2, %v4705_v1  ;;  %v53_v23 = vld [vmem:[%s5571_s7] sm:$0xff]  ;;  %v4877_v29 = vpack.c.bf16 %v56_v28, %v55_v27  ;;  %v4708_v33 = vmov 1966171168   ;;  %s4709_s21 = smov 64   ;;  %s4710_s22 = smov 32   ;;  %vm358_vm5 = vcmask 261120  }
   0x8   :  { %4201 = vmatprep.mubr.msk.f32.mxu1 %vm4706_vm2, %v4705_v1  ;;  %4189 = vmatpush3.msk.msra.mxu0 %vm83_vm0, %v4838_v4  ;;  %v4866_v25 = vpack.c.bf16 %v54_v24, %v53_v23  ;;  %v4884_v30 = vld [vmem:[%s5570_s6] sm:$0x3f]  ;;  %v326_v34 = vunpack.c.l.s4 %v4708_v33  ;;  %s4711_s26 = smov 96   ;;  %vm3705_vm6 = vcmask 257024   ;;  %vm3777_vm7 = vcmask 7168  }
   0x9   :  { %4204 = vmatprep.subr.mxu0 %v4705_v1  ;;  %4448 = vmatprep.subr.bf16.mxu1 %v4707_v26  ;;  %v4945_v52 = vld [vmem:[%s5572_s8] ss:$0 sm:$0xff]  ;;  %vm3779_vm8 = vcmask 15360   ;;  %vm3781_vm9 = vcmask 23552   ;;  %vm3783_vm10 = vcmask 31744   ;;  %vm3785_vm11 = vcmask 39936  }
   0xa   :  { %4450 = vmatpush3.bf16.msra.mxu1 %v4866_v25  ;;  %v327_v36 = vunpack.c.0.s8 %v326_v34  ;;  %vm3788_vm12 = vcmask 56320   ;;  %vm3791_vm13 = vcmask 60416  }
   0xb   :  { %4451 = vmatprep.subr.bf16.mxu1 %v4707_v26 }
   0xc   :  { %v4908_v38 = vsub.s32 %v327_v36, %v329_v37 }
   0xe   :  { %4453 = vmatpush3.bf16.msra.mxu1 %v4877_v29 }
   0xf   :  { %4214 = vmatprep.subr.mxu1 %v4705_v1 }
  0x11   :  { %4202 = vmatmul.mubr.f32.vlgmr.msra.gmra.mrb[2].mxu1 %v4705_v1 }
  0x12   :  { %4215 = vmatpush3.msk.msra.mxu1 %vm83_vm0, %v4812_v2  ;;  %4216 = vmatprep.mubr.msk.f32.mxu1 %vm4706_vm2, %v4705_v1 }
  0x13   :  { %4454 = vmatprep.subr.bf16.mxu1 %v4707_v26 }
  0x15   :  { %4217 = vmatmul.mubr.msk.f32.vlgmr.msra.gmra.mrb[4].mxu1 %vm79_vm1, %v4898_v31 }
  0x16   :  { %4456 = vmatpush3.bf16.msra.mxu1 %v4866_v25  ;;  %4232 = vmatprep.mubr.msk.f32.mxu1 %vm4706_vm2, %v4705_v1 }
  0x17   :  { %4457 = vmatprep.subr.bf16.mxu1 %v4707_v26 }
  0x1a   :  { %4459 = vmatpush3.bf16.msra.mxu1 %v4877_v29 }
  0x1b   :  { %4245 = vmatprep.subr.mxu1 %v4705_v1 }
  0xd9   :  { %v153_v5 = vpop.f32.mrb[0].mxu0  ;;  %v229_v7 = vpop.f32.mrb[0].mxu1 }
  0xda   :  { %v230_v8 = vadd.f32 %v229_v7, %v153_v5  ;;  %v4182_v9 = vpop.f32.mrb[1].mxu0  ;;  %v4187_v10 = vpop.f32.mrb[1].mxu1 }
  0xdc   :  { %v233_v11 = vadd.f32 %v4846_v6, %v230_v8 }
  0xde   :  { %4534 = vtanh.f32 %v233_v11 }
  0xe4   :  { %v427_v48 = vpop.f32.mrb[2].mxu1 }
  0xe5   :  { %v4203_v49 = vpop.f32.mrb[3].mxu1 }
  0xe8   :  { %v4535_v12 = vpop.eup %4534  ;;  %v675_v50 = vpop.f32.mrb[4].mxu1 }
  0xe9   :  { %4191 = vmatmul.mubr.msk.f32.vlgmr.msra.gmra.mrb[2].mxu0 %vm79_vm1, %v4535_v12  ;;  %v4218_v51 = vpop.f32.mrb[5].mxu1 }
  0xea   :  { %4206 = vmatprep.mubr.msk.f32.mxu0 %vm4706_vm2, %v4705_v1  ;;  %4205 = vmatpush3.msk.msra.mxu0 %vm83_vm0, %v4884_v30 }
  0xeb   :  { %4209 = vmatprep.subr.mxu0 %v4705_v1 }
 0x1bc   :  { %v307_v14 = vpop.f32.mrb[2].mxu0 }
 0x1bd   :  { %v308_v15 = vadd.f32 %v4855_v13, %v307_v14  ;;  %v4192_v16 = vpop.f32.mrb[3].mxu0 }
 0x1bf   :  { %v312_v17 = vsel %vm311_vm3, %v308_v15, -inf }
 0x1c0   :  { %313 = vmax.xlane.f32.xlu0 %v312_v17 }
 0x24d   :  { %v314_v18 = vpop.xlane.xlu0 %313 }
 0x24e   :  { %v315_v19 = vsub.f32 %v308_v15, %v314_v18 }
 0x250   :  { %v316_v20 = vmul.f32 1.442695, %v315_v19 }
 0x252   :  { %4536 = vpow2.f32 %v316_v20 }
 0x25c   :  { %v4537_v21 = vpop.eup %4536 }
 0x25d   :  { %v318_v22 = vsel %vm311_vm3, %v4537_v21, 0.0 }
 0x25e   :  { %319 = vadd.xlane.f32.xlu0 %v318_v22 }
 0x2eb   :  { %v320_v32 = vpop.xlane.xlu0 %319 }
 0x2ec   :  { %4538 = vrcp.f32 %v320_v32  ;;  %v4976_v32 = vld [vmem:[%s5564_s0 + $0x8] sm:$0xf] }
 0x2f6   :  { %v4539_v39 = vpop.eup %4538 }
 0x2f7   :  { %v322_v40 = vmul.f32 %v4539_v39, %v4537_v21 }
 0x2f9   :  { %v331_v41 = vrot.slane %v322_v40, %v4908_v38  ;;  %v323_v42 = vmul.f32 %v322_v40, %v4817_v3 }
 0x2fb   :  { %v332_v43 = vcombine.high %v331_v41, %v331_v41  ;;  %v339_v44 = vrot.slane %v331_v41, %v4908_v38  ;;  %4207 = vmatmul.mubr.msk.f32.vlgmr.msra.gmra.mrb[4].mxu0 %vm79_vm1, %v323_v42 }
 0x2fc   :  { %4210 = vmatpush3.msk.msra.mxu0 %vm83_vm0, %v4805_v0  ;;  %4211 = vmatprep.mubr.msk.f32.mxu0 %vm4706_vm2, %v4705_v1 }
 0x2fd   :  { %v346_v45 = vrot.slane %v332_v43, %v4908_v38  ;;  %v347_v46 = vcombine.high %v339_v44, %v339_v44  ;;  %354 = vst.msk [vmem:[%s5578_s14] sm:$0x1] %vm353_vm4, %v339_v44  ;;  %4219 = vmatprep.subr.mxu0 %v4705_v1 }
 0x2ff   :  { %v348_v47 = vcombine.high %v346_v45, %v346_v45  ;;  %355 = vst.msk [vmem:[%s5578_s14 + $0x8] sm:$0x1] %vm353_vm4, %v346_v45  ;;  %356 = vst.msk [vmem:[%s5578_s14 + $0x10] sm:$0x1] %vm353_vm4, %v347_v46  ;;  %4212 = vmatmul.mubr.msk.f32.vlgmr.msra.gmra.mrb[6].mxu0 %vm79_vm1, %v322_v40 }
 0x300   :  { %4220 = vmatpush3.msk.msra.mxu0 %vm83_vm0, %v4838_v4  ;;  %4221 = vmatprep.mubr.msk.f32.mxu0 %vm4706_vm2, %v4705_v1 }
 0x301   :  { %357 = vst.msk [vmem:[%s5578_s14 + $0x18] sm:$0x1] %vm353_vm4, %v348_v47  ;;  %4235 = vmatprep.subr.mxu0 %v4705_v1 }
 0x3ce   :  { %v503_v53 = vpop.f32.mrb[4].mxu0 }
 0x3cf   :  { %v504_v54 = vadd.f32 %v503_v53, %v427_v48  ;;  %v4208_v55 = vpop.f32.mrb[5].mxu0 }
 0x3d1   :  { %v507_v56 = vadd.f32 %v4945_v52, %v504_v54 }
 0x3d2   :  { %v602_v57 = vpop.f32.mrb[6].mxu0 }
 0x3d3   :  { %4540 = vtanh.f32 %v507_v56  ;;  %v676_v58 = vadd.f32 %v675_v50, %v602_v57  ;;  %v4213_v59 = vpop.f32.mrb[7].mxu0  ;;  %v3982_v63 = vmul.f32 -1.442695, %v507_v56 }
 0x3d5   :  { %v679_v60 = vadd.f32 %v4846_v6, %v676_v58 }
 0x3d7   :  { %4542 = vtanh.f32 %v679_v60 }
 0x3d8   :  { %4544 = vpow2.f32 %v3982_v63 }
 0x3dd   :  { %v4541_v61 = vpop.eup %4540 }
 0x3de   :  { %517 = vrot.lane.b32.xlu1 %v4541_v61, %s4709_s21 }
 0x3e1   :  { %v4543_v62 = vpop.eup %4542 }
 0x3e2   :  { %4222 = vmatmul.mubr.msk.f32.vlgmr.msra.gmra.mrb[8].mxu0 %vm79_vm1, %v4543_v62  ;;  %v4545_v3 = vpop.eup %4544 }
 0x3e3   :  { %4236 = vmatpush3.msk.msra.mxu0 %vm83_vm0, %v4884_v30  ;;  %4237 = vmatprep.mubr.msk.f32.mxu0 %vm4706_vm2, %v4705_v1  ;;  %v511_v5 = vadd.f32 1.0, %v4545_v3 }
 0x3e4   :  { %4240 = vmatprep.subr.mxu0 %v4705_v1 }
 0x3e5   :  { %4546 = vrcp.f32 %v511_v5 }
 0x3ef   :  { %v4547_v7 = vpop.eup %4546 }
 0x3f0   :  { %v515_v15 = vmul.f32 0.0, %v4547_v7 }
 0x450   :  { %v518_v8 = vpop.permute.xlu1 %517 }
 0x451   :  { %v520_v9 = vmul.f32 %v4547_v7, %v518_v8 }
 0x453   :  { %522 = vrot.lane.b32.xlu1 %v520_v9, %s4710_s22 }
 0x4b5   :  { %v750_v10 = vpop.f32.mrb[8].mxu0 }
 0x4b6   :  { %v751_v11 = vadd.f32 %v4855_v13, %v750_v10  ;;  %v4223_v12 = vpop.f32.mrb[9].mxu0 }
 0x4b8   :  { %v754_v14 = vsel %vm311_vm3, %v751_v11, -inf }
 0x4b9   :  { %755 = vmax.xlane.f32.xlu0 %v754_v14 }
 0x4c5   :  { %v523_v16 = vpop.permute.xlu1 %522 }
 0x4c6   :  { %v4959_v17 = vadd.f32 %v523_v16, %v515_v15 }
 0x4c8   :  { %4548 = vtanh.f32 %v4959_v17 }
 0x4d2   :  { %v4549_v18 = vpop.eup %4548 }
 0x4d3   :  { %528 = vrot.lane.b32.xlu1 %v4549_v18, %s4709_s21 }
 0x545   :  { %v529_v19 = vpop.permute.xlu1 %528 }
 0x546   :  { %v4963_v20 = vmul.f32 %v4547_v7, %v529_v19  ;;  %v756_v21 = vpop.xlane.xlu0 %755 }
 0x547   :  { %v757_v22 = vsub.f32 %v751_v11, %v756_v21 }
 0x548   :  { %800 = vrot.lane.b32.xlu1 %v4963_v20, %s4710_s22 }
 0x549   :  { %v758_v23 = vmul.f32 1.442695, %v757_v22 }
 0x54b   :  { %4550 = vpow2.f32 %v758_v23  ;;  %v5049_v23 = vld [vmem:[%s5564_s0 + $0xc] sm:$0xf] }
 0x555   :  { %v4551_v24 = vpop.eup %4550 }
 0x556   :  { %v760_v27 = vsel %vm311_vm3, %v4551_v24, 0.0 }
 0x557   :  { %761 = vadd.xlane.f32.xlu0 %v760_v27 }
 0x5ba   :  { %v801_v28 = vpop.permute.xlu1 %800 }
 0x5bb   :  { %4233 = vmatmul.mubr.msk.f32.vlgmr.msra.gmra.mrb[6].mxu1 %vm358_vm5, %v801_v28 }
 0x5bc   :  { %4246 = vmatpush3.msk.msra.mxu1 %vm83_vm0, %v4812_v2  ;;  %4247 = vmatprep.mubr.msk.f32.mxu1 %vm4706_vm2, %v4705_v1 }
 0x5bd   :  { %4460 = vmatprep.subr.bf16.mxu1 %v4707_v26 }
 0x5bf   :  { %4248 = vmatmul.mubr.msk.f32.vlgmr.msra.gmra.mrb[8].mxu1 %vm79_vm1, %v4976_v32 }
 0x5c0   :  { %4462 = vmatpush3.bf16.msra.mxu1 %v4866_v25  ;;  %4263 = vmatprep.mubr.msk.f32.mxu1 %vm4706_vm2, %v4705_v1 }
 0x5c1   :  { %4463 = vmatprep.subr.bf16.mxu1 %v4707_v26 }
 0x5c4   :  { %4465 = vmatpush3.bf16.msra.mxu1 %v4877_v29 }
 0x5c5   :  { %4276 = vmatprep.subr.mxu1 %v4705_v1 }
 0x5e4   :  { %v762_v33 = vpop.xlane.xlu0 %761 }
 0x5e5   :  { %4552 = vrcp.f32 %v762_v33 }
 0x5ef   :  { %v4553_v34 = vpop.eup %4552 }
 0x5f0   :  { %v764_v35 = vmul.f32 %v4553_v34, %v4551_v24 }
 0x5f2   :  { %v773_v36 = vrot.slane %v764_v35, %v4908_v38  ;;  %v765_v37 = vmul.f32 %v4898_v31, %v764_v35 }
 0x5f4   :  { %v774_v39 = vcombine.high %v773_v36, %v773_v36  ;;  %v781_v40 = vrot.slane %v773_v36, %v4908_v38  ;;  %4238 = vmatmul.mubr.msk.f32.vlgmr.msra.gmra.mrb[10].mxu0 %vm79_vm1, %v765_v37 }
 0x5f5   :  { %4241 = vmatpush3.msk.msra.mxu0 %vm83_vm0, %v4805_v0  ;;  %4242 = vmatprep.mubr.msk.f32.mxu0 %vm4706_vm2, %v4705_v1 }
 0x5f6   :  { %v788_v41 = vrot.slane %v774_v39, %v4908_v38  ;;  %v789_v42 = vcombine.high %v781_v40, %v781_v40  ;;  %795 = vst.msk [vmem:[%s5578_s14 + $0x1] sm:$0x1] %vm353_vm4, %v781_v40  ;;  %4250 = vmatprep.subr.mxu0 %v4705_v1 }
 0x5f8   :  { %v790_v31 = vcombine.high %v788_v41, %v788_v41  ;;  %796 = vst.msk [vmem:[%s5578_s14 + $0x9] sm:$0x1] %vm353_vm4, %v788_v41  ;;  %797 = vst.msk [vmem:[%s5578_s14 + $0x11] sm:$0x1] %vm353_vm4, %v789_v42  ;;  %4243 = vmatmul.mubr.msk.f32.vlgmr.msra.gmra.mrb[12].mxu0 %vm79_vm1, %v764_v35 }
 0x5f9   :  { %4251 = vmatpush3.msk.msra.mxu0 %vm83_vm0, %v4838_v4  ;;  %4252 = vmatprep.mubr.msk.f32.mxu0 %vm4706_vm2, %v4705_v1 }
 0x5fa   :  { %798 = vst.msk [vmem:[%s5578_s14 + $0x19] sm:$0x1] %vm353_vm4, %v790_v31  ;;  %4266 = vmatprep.subr.mxu0 %v4705_v1 }
 0x68e   :  { %v870_v43 = vpop.f32.mrb[6].mxu1 }
 0x68f   :  { %v4234_v44 = vpop.f32.mrb[7].mxu1 }
 0x692   :  { %v1115_v45 = vpop.f32.mrb[8].mxu1 }
 0x693   :  { %v4249_v46 = vpop.f32.mrb[9].mxu1 }
 0x6c7   :  { %v943_v47 = vpop.f32.mrb[10].mxu0 }
 0x6c8   :  { %v944_v48 = vadd.f32 %v943_v47, %v870_v43  ;;  %v4239_v49 = vpop.f32.mrb[11].mxu0 }
 0x6ca   :  { %v947_v50 = vadd.f32 %v4945_v52, %v944_v48 }
 0x6cb   :  { %v1042_v51 = vpop.f32.mrb[12].mxu0 }
 0x6cc   :  { %4554 = vtanh.f32 %v947_v50  ;;  %v1116_v53 = vadd.f32 %v1115_v45, %v1042_v51  ;;  %v4244_v54 = vpop.f32.mrb[13].mxu0  ;;  %v3993_v58 = vmul.f32 -1.442695, %v947_v50 }
 0x6ce   :  { %v1119_v55 = vadd.f32 %v4846_v6, %v1116_v53 }
 0x6d0   :  { %4556 = vtanh.f32 %v1119_v55 }
 0x6d1   :  { %4558 = vpow2.f32 %v3993_v58 }
 0x6d6   :  { %v4555_v56 = vpop.eup %4554 }
 0x6d7   :  { %957 = vrot.lane.b32.xlu0 %v4555_v56, %s4709_s21 }
 0x6da   :  { %v4557_v57 = vpop.eup %4556 }
 0x6db   :  { %4253 = vmatmul.mubr.msk.f32.vlgmr.msra.gmra.mrb[14].mxu0 %vm79_vm1, %v4557_v57  ;;  %v4559_v59 = vpop.eup %4558 }
 0x6dc   :  { %4267 = vmatpush3.msk.msra.mxu0 %vm83_vm0, %v4884_v30  ;;  %4268 = vmatprep.mubr.msk.f32.mxu0 %vm4706_vm2, %v4705_v1  ;;  %v951_v60 = vadd.f32 1.0, %v4559_v59 }
 0x6dd   :  { %4271 = vmatprep.subr.mxu0 %v4705_v1 }
 0x6de   :  { %4560 = vrcp.f32 %v951_v60 }
 0x6e8   :  { %v4561_v61 = vpop.eup %4560 }
 0x6e9   :  { %v955_v9 = vmul.f32 %v4561_v61, %v4959_v17 }
 0x749   :  { %v958_v62 = vpop.permute.xlu0 %957 }
 0x74a   :  { %v960_v63 = vmul.f32 %v4561_v61, %v958_v62 }
 0x74c   :  { %962 = vrot.lane.b32.xlu1 %v960_v63, %s4710_s22 }
 0x7ae   :  { %v1190_v3 = vpop.f32.mrb[14].mxu0 }
 0x7af   :  { %v1191_v5 = vadd.f32 %v4855_v13, %v1190_v3  ;;  %v4254_v7 = vpop.f32.mrb[15].mxu0 }
 0x7b1   :  { %v1194_v8 = vsel %vm311_vm3, %v1191_v5, -inf }
 0x7b2   :  { %1195 = vmax.xlane.f32.xlu1 %v1194_v8 }
 0x7be   :  { %v963_v10 = vpop.permute.xlu1 %962 }
 0x7bf   :  { %v5032_v11 = vadd.f32 %v963_v10, %v955_v9 }
 0x7c1   :  { %4562 = vtanh.f32 %v5032_v11 }
 0x7cb   :  { %v4563_v12 = vpop.eup %4562 }
 0x7cc   :  { %968 = vrot.lane.b32.xlu0 %v4563_v12, %s4709_s21 }
 0x83e   :  { %v969_v14 = vpop.permute.xlu0 %968 }
 0x83f   :  { %v5036_v15 = vmul.f32 %v4561_v61, %v969_v14  ;;  %v1196_v16 = vpop.xlane.xlu1 %1195 }
 0x840   :  { %v1197_v18 = vsub.f32 %v1191_v5, %v1196_v16 }
 0x841   :  { %1240 = vrot.lane.b32.xlu1 %v5036_v15, %s4710_s22 }
 0x842   :  { %v1198_v19 = vmul.f32 1.442695, %v1197_v18 }
 0x844   :  { %4564 = vpow2.f32 %v1198_v19 }
 0x84e   :  { %v4565_v21 = vpop.eup %4564 }
 0x84f   :  { %v1200_v17 = vsel %vm311_vm3, %v4565_v21, 0.0 }
 0x850   :  { %1201 = vadd.xlane.f32.xlu0 %v1200_v17 }
 0x8b3   :  { %v1241_v22 = vpop.permute.xlu1 %1240 }
 0x8b4   :  { %4264 = vmatmul.mubr.msk.f32.vlgmr.msra.gmra.mrb[10].mxu1 %vm358_vm5, %v1241_v22 }
 0x8b5   :  { %4277 = vmatpush3.msk.msra.mxu1 %vm83_vm0, %v4812_v2  ;;  %4278 = vmatprep.mubr.msk.f32.mxu1 %vm4706_vm2, %v4705_v1 }
 0x8b6   :  { %4466 = vmatprep.subr.bf16.mxu1 %v4707_v26 }
 0x8b8   :  { %4279 = vmatmul.mubr.msk.f32.vlgmr.msra.gmra.mrb[12].mxu1 %vm79_vm1, %v5049_v23 }
 0x8b9   :  { %4468 = vmatpush3.bf16.msra.mxu1 %v4866_v25  ;;  %4294 = vmatprep.mubr.msk.f32.mxu1 %vm4706_vm2, %v4705_v1 }
 0x8ba   :  { %4469 = vmatprep.subr.bf16.mxu1 %v4707_v26 }
 0x8bd   :  { %4471 = vmatpush3.bf16.msra.mxu1 %v4877_v29 }
 0x8be   :  { %4307 = vmatprep.subr.mxu1 %v4705_v1 }
 0x8dd   :  { %v1202_v24 = vpop.xlane.xlu0 %1201 }
 0x8de   :  { %4566 = vrcp.f32 %v1202_v24 }
 0x8e8   :  { %v4567_v27 = vpop.eup %4566 }
 0x8e9   :  { %v1204_v28 = vmul.f32 %v4567_v27, %v4565_v21  ;;  %v5122_v21 = vld [vmem:[%s5564_s0 + $0x10] sm:$0xf] }
 0x8eb   :  { %v1213_v33 = vrot.slane %v1204_v28, %v4908_v38  ;;  %v1205_v34 = vmul.f32 %v4976_v32, %v1204_v28 }
 0x8ed   :  { %v1214_v35 = vcombine.high %v1213_v33, %v1213_v33  ;;  %v1221_v36 = vrot.slane %v1213_v33, %v4908_v38  ;;  %4269 = vmatmul.mubr.msk.f32.vlgmr.msra.gmra.mrb[16].mxu0 %vm79_vm1, %v1205_v34 }
 0x8ee   :  { %4272 = vmatpush3.msk.msra.mxu0 %vm83_vm0, %v4805_v0  ;;  %4273 = vmatprep.mubr.msk.f32.mxu0 %vm4706_vm2, %v4705_v1 }
 0x8ef   :  { %v1228_v37 = vrot.slane %v1214_v35, %v4908_v38  ;;  %v1229_v39 = vcombine.high %v1221_v36, %v1221_v36  ;;  %1235 = vst.msk [vmem:[%s5578_s14 + $0x2] sm:$0x1] %vm353_vm4, %v1221_v36  ;;  %4281 = vmatprep.subr.mxu0 %v4705_v1 }
 0x8f1   :  { %v1230_v32 = vcombine.high %v1228_v37, %v1228_v37  ;;  %1236 = vst.msk [vmem:[%s5578_s14 + $0xa] sm:$0x1] %vm353_vm4, %v1228_v37  ;;  %1237 = vst.msk [vmem:[%s5578_s14 + $0x12] sm:$0x1] %vm353_vm4, %v1229_v39  ;;  %4274 = vmatmul.mubr.msk.f32.vlgmr.msra.gmra.mrb[18].mxu0 %vm79_vm1, %v1204_v28 }
 0x8f2   :  { %4282 = vmatpush3.msk.msra.mxu0 %vm83_vm0, %v4838_v4  ;;  %4283 = vmatprep.mubr.msk.f32.mxu0 %vm4706_vm2, %v4705_v1 }
 0x8f3   :  { %1238 = vst.msk [vmem:[%s5578_s14 + $0x1a] sm:$0x1] %vm353_vm4, %v1230_v32  ;;  %4297 = vmatprep.subr.mxu0 %v4705_v1 }
 0x987   :  { %v1310_v40 = vpop.f32.mrb[10].mxu1 }
 0x988   :  { %v4265_v41 = vpop.f32.mrb[11].mxu1 }
 0x98b   :  { %v1555_v42 = vpop.f32.mrb[12].mxu1 }
 0x98c   :  { %v4280_v31 = vpop.f32.mrb[13].mxu1 }
 0x9c0   :  { %v1383_v43 = vpop.f32.mrb[16].mxu0 }
 0x9c1   :  { %v1384_v44 = vadd.f32 %v1383_v43, %v1310_v40  ;;  %v4270_v45 = vpop.f32.mrb[17].mxu0 }
 0x9c3   :  { %v1387_v46 = vadd.f32 %v4945_v52, %v1384_v44 }
 0x9c4   :  { %v1482_v47 = vpop.f32.mrb[18].mxu0 }
 0x9c5   :  { %4568 = vtanh.f32 %v1387_v46  ;;  %v1556_v48 = vadd.f32 %v1555_v42, %v1482_v47  ;;  %v4275_v49 = vpop.f32.mrb[19].mxu0  ;;  %v4004_v54 = vmul.f32 -1.442695, %v1387_v46 }
 0x9c7   :  { %v1559_v50 = vadd.f32 %v4846_v6, %v1556_v48 }
 0x9c9   :  { %4570 = vtanh.f32 %v1559_v50 }
 0x9ca   :  { %4572 = vpow2.f32 %v4004_v54 }
 0x9cf   :  { %v4569_v51 = vpop.eup %4568 }
 0x9d0   :  { %1397 = vrot.lane.b32.xlu0 %v4569_v51, %s4709_s21 }
 0x9d3   :  { %v4571_v53 = vpop.eup %4570 }
 0x9d4   :  { %4284 = vmatmul.mubr.msk.f32.vlgmr.msra.gmra.mrb[20].mxu0 %vm79_vm1, %v4571_v53  ;;  %v4573_v55 = vpop.eup %4572 }
 0x9d5   :  { %4298 = vmatpush3.msk.msra.mxu0 %vm83_vm0, %v4884_v30  ;;  %4299 = vmatprep.mubr.msk.f32.mxu0 %vm4706_vm2, %v4705_v1  ;;  %v1391_v56 = vadd.f32 1.0, %v4573_v55 }
 0x9d6   :  { %4302 = vmatprep.subr.mxu0 %v4705_v1 }
 0x9d7   :  { %4574 = vrcp.f32 %v1391_v56 }
 0x9e1   :  { %v4575_v57 = vpop.eup %4574 }
 0x9e2   :  { %v1395_v3 = vmul.f32 %v4575_v57, %v5032_v11 }
 0xa42   :  { %v1398_v58 = vpop.permute.xlu0 %1397 }
 0xa43   :  { %v1400_v59 = vmul.f32 %v4575_v57, %v1398_v58 }
 0xa45   :  { %1402 = vrot.lane.b32.xlu1 %v1400_v59, %s4710_s22 }
 0xaa7   :  { %v1630_v60 = vpop.f32.mrb[20].mxu0 }
 0xaa8   :  { %v1631_v61 = vadd.f32 %v4855_v13, %v1630_v60  ;;  %v4285_v62 = vpop.f32.mrb[21].mxu0 }
 0xaaa   :  { %v1634_v63 = vsel %vm311_vm3, %v1631_v61, -inf }
 0xaab   :  { %1635 = vmax.xlane.f32.xlu1 %v1634_v63 }
 0xab7   :  { %v1403_v5 = vpop.permute.xlu1 %1402 }
 0xab8   :  { %v5105_v7 = vadd.f32 %v1403_v5, %v1395_v3 }
 0xaba   :  { %4576 = vtanh.f32 %v5105_v7 }
 0xac4   :  { %v4577_v8 = vpop.eup %4576 }
 0xac5   :  { %1408 = vrot.lane.b32.xlu0 %v4577_v8, %s4709_s21 }
 0xb37   :  { %v1409_v9 = vpop.permute.xlu0 %1408 }
 0xb38   :  { %v5109_v10 = vmul.f32 %v4575_v57, %v1409_v9  ;;  %v1636_v12 = vpop.xlane.xlu1 %1635 }
 0xb39   :  { %v1637_v14 = vsub.f32 %v1631_v61, %v1636_v12 }
 0xb3a   :  { %1680 = vrot.lane.b32.xlu1 %v5109_v10, %s4710_s22 }
 0xb3b   :  { %v1638_v16 = vmul.f32 1.442695, %v1637_v14 }
 0xb3d   :  { %4578 = vpow2.f32 %v1638_v16 }
 0xb47   :  { %v4579_v18 = vpop.eup %4578 }
 0xb48   :  { %v1640_v11 = vsel %vm311_vm3, %v4579_v18, 0.0 }
 0xb49   :  { %1641 = vadd.xlane.f32.xlu0 %v1640_v11  ;;  %v5195_v11 = vld [vmem:[%s5564_s0 + $0x14] sm:$0xf] }
 0xbac   :  { %v1681_v19 = vpop.permute.xlu1 %1680 }
 0xbad   :  { %4295 = vmatmul.mubr.msk.f32.vlgmr.msra.gmra.mrb[14].mxu1 %vm358_vm5, %v1681_v19 }
 0xbae   :  { %4308 = vmatpush3.msk.msra.mxu1 %vm83_vm0, %v4812_v2  ;;  %4309 = vmatprep.mubr.msk.f32.mxu1 %vm4706_vm2, %v4705_v1 }
 0xbaf   :  { %4472 = vmatprep.subr.bf16.mxu1 %v4707_v26 }
 0xbb1   :  { %4310 = vmatmul.mubr.msk.f32.vlgmr.msra.gmra.mrb[16].mxu1 %vm79_vm1, %v5122_v21 }
 0xbb2   :  { %4474 = vmatpush3.bf16.msra.mxu1 %v4866_v25  ;;  %4325 = vmatprep.mubr.msk.f32.mxu1 %vm4706_vm2, %v4705_v1 }
 0xbb3   :  { %4475 = vmatprep.subr.bf16.mxu1 %v4707_v26 }
 0xbb6   :  { %4477 = vmatpush3.bf16.msra.mxu1 %v4877_v29 }
 0xbb7   :  { %4338 = vmatprep.subr.mxu1 %v4705_v1 }
 0xbd6   :  { %v1642_v17 = vpop.xlane.xlu0 %1641 }
 0xbd7   :  { %4580 = vrcp.f32 %v1642_v17 }
 0xbe1   :  { %v4581_v22 = vpop.eup %4580 }
 0xbe2   :  { %v1644_v24 = vmul.f32 %v4581_v22, %v4579_v18 }
 0xbe4   :  { %v1653_v27 = vrot.slane %v1644_v24, %v4908_v38  ;;  %v1645_v28 = vmul.f32 %v5049_v23, %v1644_v24 }
 0xbe6   :  { %v1654_v33 = vcombine.high %v1653_v27, %v1653_v27  ;;  %v1661_v34 = vrot.slane %v1653_v27, %v4908_v38  ;;  %4300 = vmatmul.mubr.msk.f32.vlgmr.msra.gmra.mrb[22].mxu0 %vm79_vm1, %v1645_v28 }
 0xbe7   :  { %4303 = vmatpush3.msk.msra.mxu0 %vm83_vm0, %v4805_v0  ;;  %4304 = vmatprep.mubr.msk.f32.mxu0 %vm4706_vm2, %v4705_v1 }
 0xbe8   :  { %v1668_v35 = vrot.slane %v1654_v33, %v4908_v38  ;;  %v1669_v36 = vcombine.high %v1661_v34, %v1661_v34  ;;  %1675 = vst.msk [vmem:[%s5578_s14 + $0x3] sm:$0x1] %vm353_vm4, %v1661_v34  ;;  %4312 = vmatprep.subr.mxu0 %v4705_v1 }
 0xbea   :  { %v1670_v23 = vcombine.high %v1668_v35, %v1668_v35  ;;  %1676 = vst.msk [vmem:[%s5578_s14 + $0xb] sm:$0x1] %vm353_vm4, %v1668_v35  ;;  %1677 = vst.msk [vmem:[%s5578_s14 + $0x13] sm:$0x1] %vm353_vm4, %v1669_v36  ;;  %4305 = vmatmul.mubr.msk.f32.vlgmr.msra.gmra.mrb[24].mxu0 %vm79_vm1, %v1644_v24 }
 0xbeb   :  { %4313 = vmatpush3.msk.msra.mxu0 %vm83_vm0, %v4838_v4  ;;  %4314 = vmatprep.mubr.msk.f32.mxu0 %vm4706_vm2, %v4705_v1 }
 0xbec   :  { %1678 = vst.msk [vmem:[%s5578_s14 + $0x1b] sm:$0x1] %vm353_vm4, %v1670_v23  ;;  %4328 = vmatprep.subr.mxu0 %v4705_v1 }
 0xc80   :  { %v1750_v37 = vpop.f32.mrb[14].mxu1 }
 0xc81   :  { %v4296_v39 = vpop.f32.mrb[15].mxu1 }
 0xc84   :  { %v1995_v32 = vpop.f32.mrb[16].mxu1 }
 0xc85   :  { %v4311_v40 = vpop.f32.mrb[17].mxu1 }
 0xcb9   :  { %v1823_v41 = vpop.f32.mrb[22].mxu0 }
 0xcba   :  { %v1824_v42 = vadd.f32 %v1823_v41, %v1750_v37  ;;  %v4301_v31 = vpop.f32.mrb[23].mxu0 }
 0xcbc   :  { %v1827_v43 = vadd.f32 %v4945_v52, %v1824_v42 }
 0xcbd   :  { %v1922_v44 = vpop.f32.mrb[24].mxu0 }
 0xcbe   :  { %4582 = vtanh.f32 %v1827_v43  ;;  %v1996_v45 = vadd.f32 %v1995_v32, %v1922_v44  ;;  %v4306_v46 = vpop.f32.mrb[25].mxu0  ;;  %v4015_v50 = vmul.f32 -1.442695, %v1827_v43 }
 0xcc0   :  { %v1999_v47 = vadd.f32 %v4846_v6, %v1996_v45 }
 0xcc2   :  { %4584 = vtanh.f32 %v1999_v47 }
 0xcc3   :  { %4586 = vpow2.f32 %v4015_v50 }
 0xcc8   :  { %v4583_v48 = vpop.eup %4582 }
 0xcc9   :  { %1837 = vrot.lane.b32.xlu0 %v4583_v48, %s4709_s21 }
 0xccc   :  { %v4585_v49 = vpop.eup %4584 }
 0xccd   :  { %4315 = vmatmul.mubr.msk.f32.vlgmr.msra.gmra.mrb[26].mxu0 %vm79_vm1, %v4585_v49  ;;  %v4587_v51 = vpop.eup %4586 }
 0xcce   :  { %4329 = vmatpush3.msk.msra.mxu0 %vm83_vm0, %v4884_v30  ;;  %4330 = vmatprep.mubr.msk.f32.mxu0 %vm4706_vm2, %v4705_v1  ;;  %v1831_v53 = vadd.f32 1.0, %v4587_v51 }
 0xccf   :  { %4333 = vmatprep.subr.mxu0 %v4705_v1 }
 0xcd0   :  { %4588 = vrcp.f32 %v1831_v53 }
 0xcda   :  { %v4589_v54 = vpop.eup %4588 }
 0xcdb   :  { %v1835_v61 = vmul.f32 %v4589_v54, %v5105_v7 }
 0xd3b   :  { %v1838_v55 = vpop.permute.xlu0 %1837 }
 0xd3c   :  { %v1840_v56 = vmul.f32 %v4589_v54, %v1838_v55 }
 0xd3e   :  { %1842 = vrot.lane.b32.xlu1 %v1840_v56, %s4710_s22 }
 0xda0   :  { %v2070_v57 = vpop.f32.mrb[26].mxu0 }
 0xda1   :  { %v2071_v58 = vadd.f32 %v4855_v13, %v2070_v57  ;;  %v4316_v59 = vpop.f32.mrb[27].mxu0 }
 0xda3   :  { %v2074_v60 = vsel %vm311_vm3, %v2071_v58, -inf }
 0xda4   :  { %2075 = vmax.xlane.f32.xlu1 %v2074_v60 }
 0xdb0   :  { %v1843_v62 = vpop.permute.xlu1 %1842 }
 0xdb1   :  { %v5178_v63 = vadd.f32 %v1843_v62, %v1835_v61 }
 0xdb3   :  { %4590 = vtanh.f32 %v5178_v63 }
 0xdbd   :  { %v4591_v3 = vpop.eup %4590 }
 0xdbe   :  { %1848 = vrot.lane.b32.xlu0 %v4591_v3, %s4709_s21 }
 0xe30   :  { %v1849_v5 = vpop.permute.xlu0 %1848 }
 0xe31   :  { %v5182_v8 = vmul.f32 %v4589_v54, %v1849_v5  ;;  %v2076_v9 = vpop.xlane.xlu1 %2075 }
 0xe32   :  { %v2077_v12 = vsub.f32 %v2071_v58, %v2076_v9 }
 0xe33   :  { %2120 = vrot.lane.b32.xlu1 %v5182_v8, %s4710_s22 }
 0xe34   :  { %v2078_v14 = vmul.f32 1.442695, %v2077_v12  ;;  %v5268_v12 = vld [vmem:[%s5564_s0 + $0x18] sm:$0xf] }
 0xe36   :  { %4592 = vpow2.f32 %v2078_v14 }
 0xe40   :  { %v4593_v16 = vpop.eup %4592 }
 0xe41   :  { %v2080_v7 = vsel %vm311_vm3, %v4593_v16, 0.0 }
 0xe42   :  { %2081 = vadd.xlane.f32.xlu0 %v2080_v7 }
 0xea5   :  { %v2121_v18 = vpop.permute.xlu1 %2120 }
 0xea6   :  { %4326 = vmatmul.mubr.msk.f32.vlgmr.msra.gmra.mrb[18].mxu1 %vm358_vm5, %v2121_v18 }
 0xea7   :  { %4339 = vmatpush3.msk.msra.mxu1 %vm83_vm0, %v4812_v2  ;;  %4340 = vmatprep.mubr.msk.f32.mxu1 %vm4706_vm2, %v4705_v1 }
 0xea8   :  { %4478 = vmatprep.subr.bf16.mxu1 %v4707_v26 }
 0xeaa   :  { %4341 = vmatmul.mubr.msk.f32.vlgmr.msra.gmra.mrb[20].mxu1 %vm79_vm1, %v5195_v11 }
 0xeab   :  { %4480 = vmatpush3.bf16.msra.mxu1 %v4866_v25  ;;  %4356 = vmatprep.mubr.msk.f32.mxu1 %vm4706_vm2, %v4705_v1 }
 0xeac   :  { %4481 = vmatprep.subr.bf16.mxu1 %v4707_v26 }
 0xeaf   :  { %4483 = vmatpush3.bf16.msra.mxu1 %v4877_v29 }
 0xeb0   :  { %4369 = vmatprep.subr.mxu1 %v4705_v1 }
 0xecf   :  { %v2082_v19 = vpop.xlane.xlu0 %2081 }
 0xed0   :  { %4594 = vrcp.f32 %v2082_v19 }
 0xeda   :  { %v4595_v17 = vpop.eup %4594 }
 0xedb   :  { %v2084_v22 = vmul.f32 %v4595_v17, %v4593_v16 }
 0xedd   :  { %v2093_v24 = vrot.slane %v2084_v22, %v4908_v38  ;;  %v2085_v27 = vmul.f32 %v5122_v21, %v2084_v22 }
 0xedf   :  { %v2094_v28 = vcombine.high %v2093_v24, %v2093_v24  ;;  %v2101_v33 = vrot.slane %v2093_v24, %v4908_v38  ;;  %4331 = vmatmul.mubr.msk.f32.vlgmr.msra.gmra.mrb[28].mxu0 %vm79_vm1, %v2085_v27 }
 0xee0   :  { %4334 = vmatpush3.msk.msra.mxu0 %vm83_vm0, %v4805_v0  ;;  %4335 = vmatprep.mubr.msk.f32.mxu0 %vm4706_vm2, %v4705_v1 }
 0xee1   :  { %v2108_v34 = vrot.slane %v2094_v28, %v4908_v38  ;;  %v2109_v35 = vcombine.high %v2101_v33, %v2101_v33  ;;  %2115 = vst.msk [vmem:[%s5578_s14 + $0x4] sm:$0x1] %vm353_vm4, %v2101_v33  ;;  %4343 = vmatprep.subr.mxu0 %v4705_v1  ;;  %v5310_v28 = vld [vmem:[%s5568_s4] sm:$0x3f] }
 0xee3   :  { %v2110_v21 = vcombine.high %v2108_v34, %v2108_v34  ;;  %2116 = vst.msk [vmem:[%s5578_s14 + $0xc] sm:$0x1] %vm353_vm4, %v2108_v34  ;;  %2117 = vst.msk [vmem:[%s5578_s14 + $0x14] sm:$0x1] %vm353_vm4, %v2109_v35  ;;  %4336 = vmatmul.mubr.msk.f32.vlgmr.msra.gmra.mrb[30].mxu0 %vm79_vm1, %v2084_v22  ;;  %v5286_v22 = vld [vmem:[%s5566_s2] sm:$0x3f] }
 0xee4   :  { %4344 = vmatpush3.msk.msra.mxu0 %vm83_vm0, %v4838_v4  ;;  %4345 = vmatprep.mubr.msk.f32.mxu0 %vm4706_vm2, %v4705_v1 }
 0xee5   :  { %2118 = vst.msk [vmem:[%s5578_s14 + $0x1c] sm:$0x1] %vm353_vm4, %v2110_v21  ;;  %4359 = vmatprep.subr.mxu0 %v4705_v1 }
 0xf79   :  { %v2190_v0 = vpop.f32.mrb[18].mxu1 }
 0xf7a   :  { %v4327_v36 = vpop.f32.mrb[19].mxu1 }
 0xf7d   :  { %v2435_v23 = vpop.f32.mrb[20].mxu1 }
 0xf7e   :  { %v4342_v37 = vpop.f32.mrb[21].mxu1 }
 0xfb2   :  { %v2263_v39 = vpop.f32.mrb[28].mxu0 }
 0xfb3   :  { %v2264_v32 = vadd.f32 %v2263_v39, %v2190_v0  ;;  %v4332_v40 = vpop.f32.mrb[29].mxu0 }
 0xfb5   :  { %v2267_v41 = vadd.f32 %v4945_v52, %v2264_v32 }
 0xfb6   :  { %v2362_v4 = vpop.f32.mrb[30].mxu0 }
 0xfb7   :  { %4596 = vtanh.f32 %v2267_v41  ;;  %v2436_v42 = vadd.f32 %v2435_v23, %v2362_v4  ;;  %v4337_v31 = vpop.f32.mrb[31].mxu0  ;;  %v4026_v46 = vmul.f32 -1.442695, %v2267_v41  ;;  %v5325_v41 = vld [vmem:[%s5567_s3] ss:$0 sm:$0xff] }
 0xfb9   :  { %v2439_v43 = vadd.f32 %v4846_v6, %v2436_v42 }
 0xfbb   :  { %4598 = vtanh.f32 %v2439_v43 }
 0xfbc   :  { %4600 = vpow2.f32 %v4026_v46 }
 0xfc1   :  { %v4597_v44 = vpop.eup %4596 }
 0xfc2   :  { %2277 = vrot.lane.b32.xlu0 %v4597_v44, %s4709_s21 }
 0xfc5   :  { %v4599_v45 = vpop.eup %4598 }
 0xfc6   :  { %4346 = vmatmul.mubr.msk.f32.vlgmr.msra.gmra.mrb[32].mxu0 %vm79_vm1, %v4599_v45  ;;  %v4601_v47 = vpop.eup %4600 }
 0xfc7   :  { %4360 = vmatpush3.msk.msra.mxu0 %vm83_vm0, %v4884_v30  ;;  %4361 = vmatprep.mubr.msk.f32.mxu0 %vm4706_vm2, %v4705_v1  ;;  %v2271_v48 = vadd.f32 1.0, %v4601_v47 }
 0xfc8   :  { %4364 = vmatprep.subr.mxu0 %v4705_v1 }
 0xfc9   :  { %4602 = vrcp.f32 %v2271_v48 }
 0xfd3   :  { %v4603_v6 = vpop.eup %4602 }
 0xfd4   :  { %v2275_v56 = vmul.f32 %v4603_v6, %v5178_v63 }
0x1034   :  { %v2278_v49 = vpop.permute.xlu0 %2277 }
0x1035   :  { %v2280_v50 = vmul.f32 %v4603_v6, %v2278_v49 }
0x1037   :  { %2282 = vrot.lane.b32.xlu1 %v2280_v50, %s4710_s22 }
0x1099   :  { %v2510_v51 = vpop.f32.mrb[32].mxu0 }
0x109a   :  { %v2511_v53 = vadd.f32 %v4855_v13, %v2510_v51  ;;  %v4347_v54 = vpop.f32.mrb[33].mxu0 }
0x109c   :  { %v2514_v55 = vsel %vm311_vm3, %v2511_v53, -inf }
0x109d   :  { %2515 = vmax.xlane.f32.xlu1 %v2514_v55 }
0x10a9   :  { %v2283_v57 = vpop.permute.xlu1 %2282 }
0x10aa   :  { %v5251_v58 = vadd.f32 %v2283_v57, %v2275_v56 }
0x10ac   :  { %4604 = vtanh.f32 %v5251_v58 }
0x10b6   :  { %v4605_v59 = vpop.eup %4604 }
0x10b7   :  { %2288 = vrot.lane.b32.xlu0 %v4605_v59, %s4709_s21 }
0x1129   :  { %v2289_v60 = vpop.permute.xlu0 %2288 }
0x112a   :  { %v5255_v61 = vmul.f32 %v4603_v6, %v2289_v60  ;;  %v2516_v62 = vpop.xlane.xlu1 %2515 }
0x112b   :  { %v2517_v3 = vsub.f32 %v2511_v53, %v2516_v62 }
0x112c   :  { %2560 = vrot.lane.b32.xlu1 %v5255_v61, %s4710_s22 }
0x112d   :  { %v2518_v13 = vmul.f32 1.442695, %v2517_v3 }
0x112f   :  { %4606 = vpow2.f32 %v2518_v13 }
0x1139   :  { %v4607_v5 = vpop.eup %4606 }
0x113a   :  { %v2520_v63 = vsel %vm311_vm3, %v4607_v5, 0.0 }
0x113b   :  { %2521 = vadd.xlane.f32.xlu0 %v2520_v63  ;;  %v5363_v63 = vld [vmem:[%s5564_s0 + $0x1c] sm:$0xf] }
0x119e   :  { %v2561_v9 = vpop.permute.xlu1 %2560 }
0x119f   :  { %4357 = vmatmul.mubr.msk.f32.vlgmr.msra.gmra.mrb[22].mxu1 %vm358_vm5, %v2561_v9 }
0x11a0   :  { %4370 = vmatpush3.msk.msra.mxu1 %vm83_vm0, %v4812_v2  ;;  %4371 = vmatprep.mubr.msk.f32.mxu1 %vm4706_vm2, %v4705_v1 }
0x11a1   :  { %4484 = vmatprep.subr.bf16.mxu1 %v4707_v26 }
0x11a3   :  { %4372 = vmatmul.mubr.msk.f32.vlgmr.msra.gmra.mrb[24].mxu1 %vm79_vm1, %v5268_v12 }
0x11a4   :  { %4486 = vmatpush3.bf16.msra.mxu1 %v4866_v25  ;;  %4387 = vmatprep.mubr.msk.f32.mxu1 %vm4706_vm2, %v4705_v1 }
0x11a5   :  { %4487 = vmatprep.subr.bf16.mxu1 %v4707_v26 }
0x11a8   :  { %4489 = vmatpush3.bf16.msra.mxu1 %v4877_v29 }
0x11a9   :  { %4400 = vmatprep.subr.mxu1 %v4705_v1 }
0x11c8   :  { %v2522_v2 = vpop.xlane.xlu0 %2521 }
0x11c9   :  { %4608 = vrcp.f32 %v2522_v2 }
0x11d3   :  { %v4609_v14 = vpop.eup %4608 }
0x11d4   :  { %v2524_v16 = vmul.f32 %v4609_v14, %v4607_v5  ;;  %v4654_v5 = vld [vmem:[%s5565_s1] sm:$0x3f] }
0x11d6   :  { %v2533_v7 = vrot.slane %v2524_v16, %v4908_v38  ;;  %v2525_v18 = vmul.f32 %v5195_v11, %v2524_v16 }
0x11d8   :  { %v2534_v19 = vcombine.high %v2533_v7, %v2533_v7  ;;  %v2541_v17 = vrot.slane %v2533_v7, %v4908_v38  ;;  %4362 = vmatmul.mubr.msk.f32.vlgmr.msra.gmra.mrb[34].mxu0 %vm79_vm1, %v2525_v18 }
0x11d9   :  { %4365 = vmatpush3.msk.msra.mxu0 %vm83_vm0, %v5286_v22  ;;  %4366 = vmatprep.mubr.msk.f32.mxu0 %vm4706_vm2, %v4705_v1 }
0x11da   :  { %v2548_v24 = vrot.slane %v2534_v19, %v4908_v38  ;;  %v2549_v27 = vcombine.high %v2541_v17, %v2541_v17  ;;  %2555 = vst.msk [vmem:[%s5578_s14 + $0x5] sm:$0x1] %vm353_vm4, %v2541_v17  ;;  %4374 = vmatprep.subr.mxu0 %v4705_v1 }
0x11dc   :  { %v2550_v11 = vcombine.high %v2548_v24, %v2548_v24  ;;  %2556 = vst.msk [vmem:[%s5578_s14 + $0xd] sm:$0x1] %vm353_vm4, %v2548_v24  ;;  %2557 = vst.msk [vmem:[%s5578_s14 + $0x15] sm:$0x1] %vm353_vm4, %v2549_v27  ;;  %4367 = vmatmul.mubr.msk.f32.vlgmr.msra.gmra.mrb[36].mxu0 %vm79_vm1, %v2524_v16 }
0x11dd   :  { %4375 = vmatpush3.msk.msra.mxu0 %vm83_vm0, %v5310_v28  ;;  %4376 = vmatprep.mubr.msk.f32.mxu0 %vm4706_vm2, %v4705_v1 }
0x11de   :  { %2558 = vst.msk [vmem:[%s5578_s14 + $0x1d] sm:$0x1] %vm353_vm4, %v2550_v11  ;;  %4390 = vmatprep.subr.mxu0 %v4705_v1 }
0x1272   :  { %v2630_v33 = vpop.f32.mrb[22].mxu1 }
0x1273   :  { %v4358_v34 = vpop.f32.mrb[23].mxu1 }
0x1276   :  { %v2875_v35 = vpop.f32.mrb[24].mxu1 }
0x1277   :  { %v4373_v21 = vpop.f32.mrb[25].mxu1 }
0x12ab   :  { %v2703_v0 = vpop.f32.mrb[34].mxu0 }
0x12ac   :  { %v2704_v36 = vadd.f32 %v2703_v0, %v2630_v33  ;;  %v4363_v23 = vpop.f32.mrb[35].mxu0 }
0x12ae   :  { %v2707_v37 = vadd.f32 %v4945_v52, %v2704_v36 }
0x12af   :  { %v2802_v39 = vpop.f32.mrb[36].mxu0 }
0x12b0   :  { %4610 = vtanh.f32 %v2707_v37  ;;  %v2876_v32 = vadd.f32 %v2875_v35, %v2802_v39  ;;  %v4368_v40 = vpop.f32.mrb[37].mxu0  ;;  %v4037_v52 = vmul.f32 -1.442695, %v2707_v37 }
0x12b2   :  { %v2879_v4 = vadd.f32 %v5325_v41, %v2876_v32  ;;  %v4656_v32 = vld [vmem:[%s5570_s6] sm:$0x3f] }
0x12b4   :  { %4612 = vtanh.f32 %v2879_v4 }
0x12b5   :  { %4614 = vpow2.f32 %v4037_v52 }
0x12ba   :  { %v4611_v42 = vpop.eup %4610 }
0x12bb   :  { %2717 = vrot.lane.b32.xlu0 %v4611_v42, %s4709_s21 }
0x12be   :  { %v4613_v31 = vpop.eup %4612 }
0x12bf   :  { %4377 = vmatmul.mubr.msk.f32.vlgmr.msra.gmra.mrb[38].mxu0 %vm79_vm1, %v4613_v31  ;;  %v4615_v43 = vpop.eup %4614 }
0x12c0   :  { %4391 = vmatpush3.msk.msra.mxu0 %vm83_vm0, %v4884_v30  ;;  %4392 = vmatprep.mubr.msk.f32.mxu0 %vm4706_vm2, %v4705_v1  ;;  %v2711_v44 = vadd.f32 1.0, %v4615_v43  ;;  %v5339_v30 = vld [vmem:[%s5569_s5] ss:$0 sm:$0xff] }
0x12c1   :  { %4395 = vmatprep.subr.mxu0 %v4705_v1 }
0x12c2   :  { %4616 = vrcp.f32 %v2711_v44 }
0x12cc   :  { %v4617_v45 = vpop.eup %4616 }
0x12cd   :  { %v2715_v51 = vmul.f32 %v4617_v45, %v5251_v58 }
0x132d   :  { %v2718_v46 = vpop.permute.xlu0 %2717 }
0x132e   :  { %v2720_v47 = vmul.f32 %v4617_v45, %v2718_v46 }
0x1330   :  { %2722 = vrot.lane.b32.xlu1 %v2720_v47, %s4710_s22 }
0x1392   :  { %v2950_v48 = vpop.f32.mrb[38].mxu0 }
0x1393   :  { %v2951_v6 = vadd.f32 %v5339_v30, %v2950_v48  ;;  %v4378_v49 = vpop.f32.mrb[39].mxu0 }
0x1395   :  { %v2954_v50 = vsel %vm311_vm3, %v2951_v6, -inf }
0x1396   :  { %2955 = vmax.xlane.f32.xlu1 %v2954_v50 }
0x13a2   :  { %v2723_v53 = vpop.permute.xlu1 %2722 }
0x13a3   :  { %v5344_v54 = vadd.f32 %v2723_v53, %v2715_v51 }
0x13a5   :  { %4618 = vtanh.f32 %v5344_v54 }
0x13af   :  { %v4619_v55 = vpop.eup %4618 }
0x13b0   :  { %2728 = vrot.lane.b32.xlu0 %v4619_v55, %s4709_s21 }
0x1422   :  { %v2729_v56 = vpop.permute.xlu0 %2728 }
0x1423   :  { %v5348_v57 = vmul.f32 %v4617_v45, %v2729_v56  ;;  %v2956_v59 = vpop.xlane.xlu1 %2955 }
0x1424   :  { %v2957_v60 = vsub.f32 %v2951_v6, %v2956_v59 }
0x1425   :  { %3000 = vrot.lane.b32.xlu1 %v5348_v57, %s4710_s22 }
0x1426   :  { %v2958_v62 = vmul.f32 1.442695, %v2957_v60 }
0x1428   :  { %4620 = vpow2.f32 %v2958_v62 }
0x1432   :  { %v4621_v3 = vpop.eup %4620 }
0x1433   :  { %v2960_v58 = vsel %vm311_vm3, %v4621_v3, 0.0 }
0x1434   :  { %2961 = vadd.xlane.f32.xlu0 %v2960_v58 }
0x1497   :  { %v3001_v13 = vpop.permute.xlu1 %3000 }
0x1498   :  { %4388 = vmatmul.mubr.msk.f32.vlgmr.msra.gmra.mrb[26].mxu1 %vm358_vm5, %v3001_v13 }
0x1499   :  { %4401 = vmatpush3.msk.msra.mxu1 %vm83_vm0, %v4654_v5  ;;  %4402 = vmatprep.mubr.msk.f32.mxu1 %vm4706_vm2, %v4705_v1 }
0x149a   :  { %4490 = vmatprep.subr.bf16.mxu1 %v4707_v26 }
0x149c   :  { %4403 = vmatmul.mubr.msk.f32.vlgmr.msra.gmra.mrb[28].mxu1 %vm79_vm1, %v5363_v63 }
0x149d   :  { %4492 = vmatpush3.bf16.msra.mxu1 %v4866_v25  ;;  %4418 = vmatprep.mubr.msk.f32.mxu1 %vm4706_vm2, %v4705_v1 }
0x149e   :  { %4493 = vmatprep.subr.bf16.mxu1 %v4707_v26 }
0x14a1   :  { %4495 = vmatpush3.bf16.msra.mxu1 %v4877_v29 }
0x14a2   :  { %4502 = vmatprep.subr.bf16.mxu1 %v4707_v26 }
0x14c1   :  { %v2962_v9 = vpop.xlane.xlu0 %2961 }
0x14c2   :  { %4622 = vrcp.f32 %v2962_v9 }
0x14cc   :  { %v4623_v2 = vpop.eup %4622 }
0x14cd   :  { %v2964_v14 = vmul.f32 %v4623_v2, %v4621_v3 }
0x14cf   :  { %v2973_v16 = vrot.slane %v2964_v14, %v4908_v38  ;;  %v2965_v7 = vmul.f32 %v5268_v12, %v2964_v14 }
0x14d1   :  { %v2974_v18 = vcombine.high %v2973_v16, %v2973_v16  ;;  %v2981_v25 = vrot.slane %v2973_v16, %v4908_v38  ;;  %4393 = vmatmul.mubr.msk.f32.vlgmr.msra.gmra.mrb[40].mxu0 %vm79_vm1, %v2965_v7 }
0x14d2   :  { %4396 = vmatpush3.msk.msra.mxu0 %vm83_vm0, %v5286_v22  ;;  %4397 = vmatprep.mubr.msk.f32.mxu0 %vm4706_vm2, %v4705_v1 }
0x14d3   :  { %v2988_v29 = vrot.slane %v2974_v18, %v4908_v38  ;;  %v2989_v19 = vcombine.high %v2981_v25, %v2981_v25  ;;  %2995 = vst.msk [vmem:[%s5578_s14 + $0x6] sm:$0x1] %vm353_vm4, %v2981_v25  ;;  %4405 = vmatprep.subr.mxu0 %v4705_v1 }
0x14d5   :  { %v2990_v12 = vcombine.high %v2988_v29, %v2988_v29  ;;  %2996 = vst.msk [vmem:[%s5578_s14 + $0xe] sm:$0x1] %vm353_vm4, %v2988_v29  ;;  %2997 = vst.msk [vmem:[%s5578_s14 + $0x16] sm:$0x1] %vm353_vm4, %v2989_v19  ;;  %4398 = vmatmul.mubr.msk.f32.vlgmr.msra.gmra.mrb[42].mxu0 %vm79_vm1, %v2964_v14 }
0x14d6   :  { %4406 = vmatpush3.msk.msra.mxu0 %vm83_vm0, %v5310_v28  ;;  %4407 = vmatprep.mubr.msk.f32.mxu0 %vm4706_vm2, %v4705_v1  ;;  %v5409_v28 = vld [vmem:[%s5572_s8] ss:$0 sm:$0xff] }
0x14d7   :  { %2998 = vst.msk [vmem:[%s5578_s14 + $0x1e] sm:$0x1] %vm353_vm4, %v2990_v12  ;;  %4421 = vmatprep.subr.mxu0 %v4705_v1 }
0x156b   :  { %v3070_v17 = vpop.f32.mrb[26].mxu1 }
0x156c   :  { %v4389_v22 = vpop.f32.mrb[27].mxu1 }
0x156f   :  { %v3315_v24 = vpop.f32.mrb[28].mxu1 }
0x1570   :  { %v4404_v27 = vpop.f32.mrb[29].mxu1 }
0x15a4   :  { %v3143_v11 = vpop.f32.mrb[40].mxu0 }
0x15a5   :  { %v3144_v33 = vadd.f32 %v3143_v11, %v3070_v17  ;;  %v4394_v34 = vpop.f32.mrb[41].mxu0 }
0x15a7   :  { %v3147_v35 = vadd.f32 %v5409_v28, %v3144_v33 }
0x15a8   :  { %v3242_v21 = vpop.f32.mrb[42].mxu0 }
0x15a9   :  { %4624 = vtanh.f32 %v3147_v35  ;;  %v3316_v0 = vadd.f32 %v3315_v24, %v3242_v21  ;;  %v4399_v36 = vpop.f32.mrb[43].mxu0  ;;  %v4048_v40 = vmul.f32 -1.442695, %v3147_v35  ;;  %v3613_v35 = vld [vmem:[%s5573_s9 + $0x8] sm:$0xff]  ;;  %v3614_v21 = vld [vmem:[%s5573_s9 + $0x10] sm:$0xff] }
0x15aa   :  { %v3615_v36 = vld [vmem:[%s5573_s9 + $0x18] sm:$0xff] }
0x15ab   :  { %v3319_v23 = vadd.f32 %v5325_v41, %v3316_v0 }
0x15ad   :  { %4626 = vtanh.f32 %v3319_v23  ;;  %v4500_v23 = vpack.c.bf16 %v3615_v36, %v3614_v21 }
0x15ae   :  { %4628 = vpow2.f32 %v4048_v40 }
0x15b3   :  { %v4625_v37 = vpop.eup %4624 }
0x15b4   :  { %3157 = vrot.lane.b32.xlu0 %v4625_v37, %s4709_s21 }
0x15b7   :  { %v4627_v39 = vpop.eup %4626 }
0x15b8   :  { %4408 = vmatmul.mubr.msk.f32.vlgmr.msra.gmra.mrb[44].mxu0 %vm79_vm1, %v4627_v39  ;;  %v4629_v41 = vpop.eup %4628 }
0x15b9   :  { %4422 = vmatpush3.msk.msra.mxu0 %vm83_vm0, %v4656_v32  ;;  %4423 = vmatprep.mubr.msk.f32.mxu0 %vm4706_vm2, %v4705_v1  ;;  %v3151_v4 = vadd.f32 1.0, %v4629_v41 }
0x15ba   :  { %4496 = vmatprep.subr.bf16.mxu0 %v4707_v26 }
0x15bb   :  { %4630 = vrcp.f32 %v3151_v4 }
0x15c5   :  { %v4631_v42 = vpop.eup %4630 }
0x15c6   :  { %v3155_v47 = vmul.f32 %v4631_v42, %v5344_v54 }
0x1626   :  { %v3158_v31 = vpop.permute.xlu0 %3157 }
0x1627   :  { %v3160_v52 = vmul.f32 %v4631_v42, %v3158_v31 }
0x1629   :  { %3162 = vrot.lane.b32.xlu1 %v3160_v52, %s4710_s22 }
0x168b   :  { %v3390_v43 = vpop.f32.mrb[44].mxu0 }
0x168c   :  { %v3391_v44 = vadd.f32 %v5339_v30, %v3390_v43  ;;  %v4409_v45 = vpop.f32.mrb[45].mxu0 }
0x168e   :  { %v3394_v46 = vsel %vm311_vm3, %v3391_v44, -inf }
0x168f   :  { %3395 = vmax.xlane.f32.xlu1 %v3394_v46 }
0x169b   :  { %v3163_v48 = vpop.permute.xlu1 %3162 }
0x169c   :  { %v3165_v6 = vadd.f32 %v3163_v48, %v3155_v47 }
0x169e   :  { %4632 = vtanh.f32 %v3165_v6 }
0x16a8   :  { %v4633_v49 = vpop.eup %4632 }
0x16a9   :  { %3168 = vrot.lane.b32.xlu0 %v4633_v49, %s4709_s21 }
0x171b   :  { %v3169_v50 = vpop.permute.xlu0 %3168 }
0x171c   :  { %v5427_v51 = vmul.f32 %v4631_v42, %v3169_v50  ;;  %v3396_v53 = vpop.xlane.xlu1 %3395  ;;  %v4061_v42 = vld [vmem:[%s5574_s10] ss:$0 sm:$0xff] }
0x171d   :  { %v3397_v55 = vsub.f32 %v3391_v44, %v3396_v53 }
0x171e   :  { %3440 = vrot.lane.b32.xlu1 %v5427_v51, %s4710_s22 }
0x171f   :  { %v3398_v30 = vmul.f32 1.442695, %v3397_v55 }
0x1721   :  { %4634 = vpow2.f32 %v3398_v30 }
0x172b   :  { %v4635_v56 = vpop.eup %4634 }
0x172c   :  { %v3400_v59 = vsel %vm311_vm3, %v4635_v56, 0.0 }
0x172d   :  { %3401 = vadd.xlane.f32.xlu0 %v3400_v59 }
0x1790   :  { %v3441_v54 = vpop.permute.xlu1 %3440 }
0x1791   :  { %4419 = vmatmul.mubr.msk.f32.vlgmr.msra.gmra.mrb[30].mxu1 %vm358_vm5, %v3441_v54 }
0x1792   :  { %4445 = vmatprep.mubr.msk.f32.mxu1 %vm4706_vm2, %v4705_v1 }
0x17ba   :  { %v3402_v60 = vpop.xlane.xlu0 %3401 }
0x17bb   :  { %4636 = vrcp.f32 %v3402_v60 }
0x17c5   :  { %v4637_v62 = vpop.eup %4636 }
0x17c6   :  { %v3404_v3 = vmul.f32 %v4637_v62, %v4635_v56 }
0x17c8   :  { %v3413_v58 = vrot.slane %v3404_v3, %v4908_v38  ;;  %v3405_v13 = vmul.f32 %v5363_v63, %v3404_v3 }
0x17ca   :  { %v3414_v5 = vcombine.high %v3413_v58, %v3413_v58  ;;  %v3421_v9 = vrot.slane %v3413_v58, %v4908_v38  ;;  %4424 = vmatmul.mubr.msk.f32.vlgmr.msra.gmra.mrb[46].mxu0 %vm79_vm1, %v3405_v13 }
0x17cb   :  { %4434 = vmatprep.mubr.msk.f32.mxu0 %vm4706_vm2, %v4705_v1 }
0x17cc   :  { %v3428_v2 = vrot.slane %v3414_v5, %v4908_v38  ;;  %v3429_v14 = vcombine.high %v3421_v9, %v3421_v9  ;;  %3435 = vst.msk [vmem:[%s5578_s14 + $0x7] sm:$0x1] %vm353_vm4, %v3421_v9 }
0x17ce   :  { %v3430_v16 = vcombine.high %v3428_v2, %v3428_v2  ;;  %3436 = vst.msk [vmem:[%s5578_s14 + $0xf] sm:$0x1] %vm353_vm4, %v3428_v2  ;;  %3437 = vst.msk [vmem:[%s5578_s14 + $0x17] sm:$0x1] %vm353_vm4, %v3429_v14 }
0x17d0   :  { %3438 = vst.msk [vmem:[%s5578_s14 + $0x1f] sm:$0x1] %vm353_vm4, %v3430_v16 }
0x1864   :  { %v3510_v1 = vpop.f32.mrb[30].mxu1 }
0x1865   :  { %v4420_v38 = vpop.f32.mrb[31].mxu1 }
0x189d   :  { %v3583_v63 = vpop.f32.mrb[46].mxu0 }
0x189e   :  { %v3584_v7 = vadd.f32 %v3583_v63, %v3510_v1  ;;  %v4425_v18 = vpop.f32.mrb[47].mxu0 }
0x18a0   :  { %v3587_v25 = vadd.f32 %v5409_v28, %v3584_v7  ;;  %v3612_v28 = vld [vmem:[%s5573_s9] sm:$0xff] }
0x18a1   :  { %v4497_v0 = vpack.c.bf16 %v3613_v35, %v3612_v28 }
0x18a2   :  { %4638 = vtanh.f32 %v3587_v25  ;;  %v4059_v19 = vmul.f32 -1.442695, %v3587_v25 }
0x18a3   :  { %4498 = vmatpush3.bf16.msra.mxu0 %v4497_v0 }
0x18a4   :  { %4640 = vpow2.f32 %v4059_v19  ;;  %4499 = vmatprep.subr.bf16.mxu0 %v4707_v26 }
0x18a7   :  { %4501 = vmatpush3.bf16.msra.mxu0 %v4500_v23 }
0x18ac   :  { %v4639_v29 = vpop.eup %4638 }
0x18ad   :  { %3597 = vrot.lane.b32.xlu0 %v4639_v29, %s4709_s21 }
0x18ae   :  { %v4641_v12 = vpop.eup %4640 }
0x18af   :  { %v3591_v17 = vadd.f32 1.0, %v4641_v12 }
0x18b1   :  { %4642 = vrcp.f32 %v3591_v17 }
0x18bb   :  { %v4643_v22 = vpop.eup %4642 }
0x18bc   :  { %v3595_v11 = vmul.f32 %v4643_v22, %v3165_v6 }
0x191f   :  { %v3598_v24 = vpop.permute.xlu0 %3597 }
0x1920   :  { %v3600_v27 = vmul.f32 %v4643_v22, %v3598_v24 }
0x1922   :  { %3602 = vrot.lane.b32.xlu1 %v3600_v27, %s4710_s22 }
0x1994   :  { %v3603_v33 = vpop.permute.xlu1 %3602 }
0x1995   :  { %v3605_v34 = vadd.f32 %v3603_v33, %v3595_v11 }
0x1997   :  { %4644 = vtanh.f32 %v3605_v34 }
0x19a1   :  { %v4645_v37 = vpop.eup %4644 }
0x19a2   :  { %3608 = vrot.lane.b32.xlu1 %v4645_v37, %s4709_s21 }
0x1a14   :  { %v3609_v39 = vpop.permute.xlu1 %3608 }
0x1a15   :  { %v5475_v32 = vmul.f32 %v4643_v22, %v3609_v39 }
0x1a17   :  { %3617 = vrot.lane.b32.xlu1 %v5475_v32, %s4710_s22 }
0x1a89   :  { %v3618_v40 = vpop.permute.xlu1 %3617 }
0x1a8a   :  { %4435 = vmatmul.mubr.msk.f32.vlgmr.msra.gmra.mrb[48].mxu0 %vm358_vm5, %v3618_v40 }
0x1b5d   :  { %v3687_v41 = vpop.f32.mrb[48].mxu0 }
0x1b5e   :  { %3710 = vrot.lane.b32.xlu1 %v3687_v41, %s4711_s26  ;;  %v4436_v4 = vpop.f32.mrb[49].mxu0  ;;  %v4712_v41 = vmov 1  }
0x1b5f   :  { %4526 = vset.pattern.permute.xlu1 %v4712_v41  ;;  %v4713_v4 = vmov 0  }
0x1b60   :  { %4525 = vset.pattern.permute.xlu0 %v4713_v4 }
0x1b62   :  { %3697 = vrot.lane.b32.xlu1 %v4061_v42, %s4711_s26 }
0x1bd0   :  { %v3711_v31 = vpop.permute.xlu1 %3710 }
0x1bd1   :  { %v3721_v52 = vmul.f32 %v3711_v31, %v5036_v15  ;;  %v3713_v43 = vmul.f32 %v3711_v31, %v4963_v20  ;;  %v3737_v44 = vmul.f32 %v3711_v31, %v5182_v8  ;;  %v3729_v45 = vmul.f32 %v3711_v31, %v5109_v10 }
0x1bd2   :  { %v3753_v46 = vmul.f32 %v3711_v31, %v5348_v57  ;;  %v3745_v47 = vmul.f32 %v3711_v31, %v5255_v61  ;;  %v3769_v48 = vmul.f32 %v3711_v31, %v5475_v32  ;;  %v3761_v6 = vmul.f32 %v3711_v31, %v5427_v51 }
0x1bd3   :  { %3723 = vrot.lane.b32.xlu0 %v3721_v52, %s4710_s22  ;;  %3715 = vrot.lane.b32.xlu1 %v3713_v43, %s4710_s22  ;;  %v4714_v43 = vmov 2  }
0x1bd4   :  { %v3698_v49 = vpop.permute.xlu1 %3697 }
0x1bd5   :  { %v3700_v50 = vmul.f32 %v3698_v49, %v5475_v32  ;;  %v3853_v49 = vld [vmem:[%s5575_s11 + $0x8] sm:$0xff] }
0x1bd7   :  { %3739 = vrot.lane.b32.xlu0 %v3737_v44, %s4710_s22  ;;  %3731 = vrot.lane.b32.xlu1 %v3729_v45, %s4710_s22  ;;  %v4715_v44 = vmov 7   ;;  %v4716_v45 = vmov 3  }
0x1bdb   :  { %3755 = vrot.lane.b32.xlu0 %v3753_v46, %s4710_s22  ;;  %3747 = vrot.lane.b32.xlu1 %v3745_v47, %s4710_s22  ;;  %v4717_v46 = vmov 4   ;;  %v4718_v47 = vmov 5  }
0x1bdf   :  { %3771 = vrot.lane.b32.xlu0 %v3769_v48, %s4710_s22  ;;  %3763 = vrot.lane.b32.xlu1 %v3761_v6, %s4710_s22  ;;  %v4719_v48 = vmov 6   ;;  %v3852_v6 = vld [vmem:[%s5575_s11] sm:$0xff] }
0x1be3   :  { %3702 = vrot.lane.b32.xlu1 %v3700_v50, %s4710_s22  ;;  %v3854_v50 = vld [vmem:[%s5575_s11 + $0x10] sm:$0xff] }
0x1c45   :  { %v3724_v53 = vpop.permute.xlu0 %3723  ;;  %v3716_v55 = vpop.permute.xlu1 %3715 }
0x1c46   :  { %v3726_v30 = vsel %vm3705_vm6, %v3724_v53, 0.0  ;;  %v3718_v56 = vsel %vm3705_vm6, %v3716_v55, 0.0  ;;  %v4503_v53 = vpack.c.bf16 %v3853_v49, %v3852_v6  ;;  %v3855_v55 = vld [vmem:[%s5575_s11 + $0x18] sm:$0xff]  ;;  %s4720_s11 = smov [#allocation4]  }
0x1c47   :  { %3727 = vadd.xlane.f32.xlu1 %v3726_v30  ;;  %3719 = vadd.xlane.f32.xlu0 %v3718_v56  ;;  %v4506_v30 = vpack.c.bf16 %v3855_v55, %v3854_v50  ;;  %s3958_s8 = sshll.u32 %s4720_s11, 4  ;;  %s3959_s8 = int_to_ptr.vmem [resolvable:$true] %s3958_s8 }
0x1c48   :  { %4504 = vmatpush3.bf16.msra.mxu1 %v4503_v53  ;;  %s4657_s4 = scalar_lea.vmem %s3959_s8, 64  ;;  %p4662_p1 = scmp.lt.s32.totalorder %s3959_s8, %s3959_s8 }
0x1c49   :  { %v3740_v59 = vpop.permute.xlu0 %3739  ;;  %v3732_v54 = vpop.permute.xlu1 %3731  ;;  %4505 = vmatprep.subr.bf16.mxu1 %v4707_v26  ;;  %p4658_p0 = scmp.ne.s32.totalorder %s3959_s8, %s4657_s4  ;;  %p4663_p2 = scmp.lt.s32.totalorder %s4657_s4, %s4657_s4 }
0x1c4a   :  { %v3734_v60 = vsel %vm3705_vm6, %v3732_v54, 0.0  ;;  %v3742_v58 = vsel %vm3705_vm6, %v3740_v59, 0.0 }
0x1c4b   :  { %3735 = vadd.xlane.f32.xlu0 %v3734_v60  ;;  %p4664_p3 = por %p4663_p2, %p4662_p1 }
0x1c4c   :  { %4507 = vmatpush3.bf16.msra.mxu1 %v4506_v30 }
0x1c4d   :  { %v3756_v62 = vpop.permute.xlu0 %3755  ;;  %v3748_v3 = vpop.permute.xlu1 %3747  ;;  %p4665_p4 = pnand %p4664_p3, %p4658_p0 }
0x1c4e   :  { %v3750_v13 = vsel %vm3705_vm6, %v3748_v3, 0.0  ;;  %v3758_v9 = vsel %vm3705_vm6, %v3756_v62, 0.0 }
0x1c4f   :  { %3743 = vadd.xlane.f32.xlu0 %v3742_v58  ;;  %3751 = vadd.xlane.f32.xlu1 %v3750_v13 }
0x1c51   :  { %v3764_v5 = vpop.permute.xlu1 %3763  ;;  %v3772_v14 = vpop.permute.xlu0 %3771 }
0x1c52   :  { %v3766_v2 = vsel %vm3705_vm6, %v3764_v5, 0.0  ;;  %v3774_v1 = vsel %vm3705_vm6, %v3772_v14, 0.0 }
0x1c53   :  { %3759 = vadd.xlane.f32.xlu0 %v3758_v9  ;;  %3767 = vadd.xlane.f32.xlu1 %v3766_v2 }
0x1c55   :  { %v3703_v16 = vpop.permute.xlu1 %3702 }
0x1c56   :  { %v3706_v38 = vsel %vm3705_vm6, %v3703_v16, 0.0 }
0x1c57   :  { %3775 = vadd.xlane.f32.xlu0 %v3774_v1  ;;  %3707 = vadd.xlane.f32.xlu1 %v3706_v38 }
0x1cd4   :  { %v3720_v63 = vpop.xlane.xlu0 %3719  ;;  %v3728_v7 = vpop.xlane.xlu1 %3727 }
0x1cd5   :  { %v3778_v25 = vsel %vm3777_vm7, %v3720_v63, %v3728_v7 }
0x1cd8   :  { %v3736_v18 = vpop.xlane.xlu0 %3735 }
0x1cd9   :  { %v3780_v29 = vsel %vm3779_vm8, %v3778_v25, %v3736_v18 }
0x1cdc   :  { %v3744_v19 = vpop.xlane.xlu0 %3743  ;;  %v3752_v12 = vpop.xlane.xlu1 %3751 }
0x1cdd   :  { %v3782_v17 = vsel %vm3781_vm9, %v3780_v29, %v3744_v19 }
0x1cde   :  { %v3784_v22 = vsel %vm3783_vm10, %v3782_v17, %v3752_v12 }
0x1ce0   :  { %v3760_v24 = vpop.xlane.xlu0 %3759  ;;  %v3768_v27 = vpop.xlane.xlu1 %3767 }
0x1ce1   :  { %v3786_v11 = vsel %vm3785_vm11, %v3784_v22, %v3760_v24 }
0x1ce2   :  { %v3787_v33 = vsel %vm79_vm1, %v3786_v11, %v3768_v27 }
0x1ce4   :  { %v3776_v34 = vpop.xlane.xlu0 %3775  ;;  %v3708_v28 = vpop.xlane.xlu1 %3707 }
0x1ce5   :  { %v3789_v35 = vsel %vm3788_vm12, %v3787_v33, %v3776_v34 }
0x1ce6   :  { %v3790_v21 = vadd.f32 %v3789_v35, %v3708_v28 }
0x1ce8   :  { %v3792_v0 = vsel %vm3791_vm13, %v3790_v21, -inf }
0x1ce9   :  { %3793 = vmax.xlane.f32.xlu0 %v3792_v0 }
0x1d76   :  { %v3794_v36 = vpop.xlane.xlu0 %3793 }
0x1d77   :  { %v3795_v23 = vsub.f32 %v3790_v21, %v3794_v36 }
0x1d79   :  { %v3796_v37 = vmul.f32 1.442695, %v3795_v23 }
0x1d7b   :  { %4646 = vpow2.f32 %v3796_v37 }
0x1d85   :  { %v4647_v39 = vpop.eup %4646 }
0x1d86   :  { %v3798_v40 = vsel %vm3791_vm13, %v4647_v39, 0.0 }
0x1d87   :  { %3799 = vadd.xlane.f32.xlu1 %v3798_v40 }
0x1e14   :  { %v3800_v42 = vpop.xlane.xlu1 %3799 }
0x1e15   :  { %4648 = vrcp.f32 %v3800_v42 }
0x1e1f   :  { %v4649_v31 = vpop.eup %4648 }
0x1e20   :  { %v3802_v52 = vmul.f32 %v4649_v31, %v4647_v39 }
0x1e22   :  { %3803 = vst.msk [vmem:[#allocation4] sm:$0xf] %vm3791_vm13, %v3802_v52  ;;  %3811 = vperm.xlu1 %4526, %v3802_v52   ;;  %3806 = vperm.xlu0 %4525, %v3802_v52  }
0x1e26   :  { %4527 = vset.pattern.permute.xlu1 %v4714_v43  ;;  %4533 = vset.pattern.permute.xlu0 %v4715_v44 }
0x1e27   :  { %3817 = vperm.xlu1 %4527, %v3802_v52  }
0x1e2b   :  { %4528 = vset.pattern.permute.xlu1 %v4716_v45 }
0x1e2c   :  { %3823 = vperm.xlu1 %4528, %v3802_v52  }
0x1e30   :  { %4529 = vset.pattern.permute.xlu1 %v4717_v46 }
0x1e31   :  { %3829 = vperm.xlu1 %4529, %v3802_v52  }
0x1e35   :  { %4530 = vset.pattern.permute.xlu1 %v4718_v47 }
0x1e36   :  { %3835 = vperm.xlu1 %4530, %v3802_v52  }
0x1e3a   :  { %4531 = vset.pattern.permute.xlu1 %v4719_v48 }
0x1e3b   :  { %3841 = vperm.xlu1 %4531, %v3802_v52  }
0x1e3f   :  { %4532 = vset.pattern.permute.xlu1 %v4715_v44 }
0x1e40   :  { %3847 = vperm.xlu1 %4532, %v3802_v52  }
0x1ea1   :  { %v3812_v56 = vpop.permute.xlu1 %3811  ;;  %v3807_v60 = vpop.permute.xlu0 %3806 }
0x1ea2   :  { %v3814_v3 = vmul.f32 %v3812_v56, %v5036_v15  ;;  %v3809_v58 = vmul.f32 %v3807_v60, %v4963_v20 }
0x1ea4   :  { %v3815_v9 = vadd.f32 %v3814_v3, %v3809_v58 }
0x1ea6   :  { %v3818_v59 = vpop.permute.xlu1 %3817 }
0x1ea7   :  { %v3820_v13 = vmul.f32 %v3818_v59, %v5109_v10 }
0x1ea9   :  { %v3821_v14 = vadd.f32 %v3820_v13, %v3815_v9 }
0x1eab   :  { %v3824_v54 = vpop.permute.xlu1 %3823 }
0x1eac   :  { %v3826_v2 = vmul.f32 %v3824_v54, %v5182_v8 }
0x1eae   :  { %v3827_v26 = vadd.f32 %v3826_v2, %v3821_v14 }
0x1eb0   :  { %v3830_v62 = vpop.permute.xlu1 %3829 }
0x1eb1   :  { %v3832_v16 = vmul.f32 %v3830_v62, %v5255_v61 }
0x1eb3   :  { %v3833_v63 = vadd.f32 %v3832_v16, %v3827_v26 }
0x1eb5   :  { %v3836_v5 = vpop.permute.xlu1 %3835 }
0x1eb6   :  { %v3838_v1 = vmul.f32 %v3836_v5, %v5348_v57 }
0x1eb8   :  { %v3839_v18 = vadd.f32 %v3838_v1, %v3833_v63 }
0x1eba   :  { %v3842_v38 = vpop.permute.xlu1 %3841 }
0x1ebb   :  { %v3844_v7 = vmul.f32 %v3842_v38, %v5427_v51 }
0x1ebd   :  { %v3845_v25 = vadd.f32 %v3844_v7, %v3839_v18 }
0x1ebf   :  { %v3848_v15 = vpop.permute.xlu1 %3847 }
0x1ec0   :  { %v3850_v20 = vmul.f32 %v3848_v15, %v5475_v32 }
0x1ec2   :  { %v3851_v10 = vadd.f32 %v3850_v20, %v3845_v25 }
0x1ec4   :  { %3864 = vrot.lane.b32.xlu0 %v3851_v10, %s4710_s22 }
0x1f36   :  { %v3865_v29 = vpop.permute.xlu0 %3864 }
0x1f37   :  { %4446 = vmatmul.mubr.msk.f32.vlgmr.msra.gmra.mrb[32].mxu1 %vm358_vm5, %v3865_v29 }
0x1f38   :  { %4668 = shalt.err (!%p4665_p4)
}
0x1f39   :  { %s4669_s19 = scalar_lea.hbm %s5579_s15, 64 }
0x1f3a   :  { %p4670_p5 = scmp.ne.s32.totalorder %s5579_s15, %s4669_s19  ;;  %p4673_p6 = scmp.lt.u32.totalorder %s4669_s19, %s5579_s15 }
0x1f3c   :  { %p4675_p7 = pnand %p4673_p6, %p4670_p5 }
0x1f3e   :  { %4678 = shalt.err (!%p4675_p7)
}
0x1f3f   :  { %3961 = dma.vmem_to_hbm [thread:$0]  %s3959_s8, 64, %s5579_s15, [#allocation5]   ;;  %v4062_v8 = vld [vmem:[%s5576_s12] ss:$0 sm:$0xff]  ;;  %vm3938_vm14 = vcmask 35840  }
0x1f40   :  { %s4721_s7 = smov [#allocation2]  }
0x1f41   :  { %s3946_s25 = sshll.u32 %s4721_s7, 4  ;;  %s3947_s25 = int_to_ptr.vmem [resolvable:$true] %s3946_s25 }
0x1f42   :  { %s4679_s2 = scalar_lea.vmem %s3947_s25, 64  ;;  %p4684_p9 = scmp.lt.s32.totalorder %s3947_s25, %s3947_s25 }
0x1f43   :  { %p4680_p8 = scmp.ne.s32.totalorder %s3947_s25, %s4679_s2  ;;  %p4685_p10 = scmp.lt.s32.totalorder %s4679_s2, %s4679_s2 }
0x1f45   :  { %p4686_p11 = por %p4685_p10, %p4684_p9 }
0x1f47   :  { %p4687_p12 = pnand %p4686_p11, %p4680_p8 }
0x200a   :  { %v3934_v61 = vpop.f32.mrb[32].mxu1 }
0x200b   :  { %v3935_v57 = vadd.f32 %v4062_v8, %v3934_v61  ;;  %v4447_v51 = vpop.f32.mrb[33].mxu1 }
0x200d   :  { %3939 = vst.msk [vmem:[#allocation2] sm:$0xf] %vm3938_vm14, %v3935_v57 }
0x200e   :  { %4690 = shalt.err (!%p4687_p12)
}
0x200f   :  { %s4691_s9 = scalar_lea.hbm %s5577_s13, 64 }
0x2010   :  { %p4692_p13 = scmp.ne.s32.totalorder %s5577_s13, %s4691_s9  ;;  %p4695_p0 = scmp.lt.u32.totalorder %s4691_s9, %s5577_s13 }
0x2012   :  { %p4697_p1 = pnand %p4695_p0, %p4692_p13 }
0x2014   :  { %4700 = shalt.err (!%p4697_p1)
}
0x2015   :  { %3949 = dma.vmem_to_hbm [thread:$0]  %s3947_s25, 64, %s5577_s13, [#allocation3]  }
0x2016   :  { %4701 = dma.done.wait [#allocation3], 64  }
0x2017   :  { %4702 = vsyncadd [#allocation3], 4294967232 }
0x2018   :  { %4703 = dma.done.wait [#allocation5], 64  }
0x2019   :  { %4704 = vsyncadd [#allocation5], 4294967232 }
0x201a   :  { %3970 = vsyncpa [#allocation3], 1 }
0x201b   :  { %3971 = vsyncpa [#allocation5], 1 }

</bundles_post_ra>
